<compile_context>
chip_gen: v6e
topology: v6e:2x2x1
jax: 0.10.0
libtpu: 0.0.40
codegen_flags: <defaults>
</compile_context>

<pallas_src>
import functools

import jax
import jax.numpy as jnp
from jax import lax
from jax.experimental import pallas as pl
from jax.experimental.pallas import tpu as pltpu


def transformer_block_kernel(x_ref,
                             ln1_s_ref, ln1_b_ref,
                             wq_ref, wk_ref, wv_ref, wo_ref, bo_ref,
                             ln2_s_ref, ln2_b_ref,
                             w1_ref, b1_ref, w2_ref, b2_ref,
                             o_ref,
                             k_scr, v_scr, xn_scr,
                             *, num_heads):
    """Grid is (batch, query_tile). x_ref is the full (1, T, D) sequence for the
    current batch element; o_ref is the (1, tq, D) output tile."""
    f32 = jnp.float32
    bf16 = jnp.bfloat16
    eps = f32(1e-5)

    _, T, D = x_ref.shape
    _, tq, _ = o_ref.shape
    H = num_heads
    hd = D // H
    qi = pl.program_id(1)

    def layernorm(z, s_ref, b_ref):
        mean = jnp.mean(z, axis=-1, keepdims=True)
        var = jnp.mean((z - mean) ** 2, axis=-1, keepdims=True)   # unbiased=False
        return (z - mean) * lax.rsqrt(var + eps) * s_ref[0] + b_ref[0]

    def gelu(z):
        c = f32(0.7978845608028654)  # sqrt(2/pi)
        return 0.5 * z * (1.0 + jnp.tanh(c * (z + 0.044715 * (z * z * z))))

    # ---- once per batch element: LN(x), K, V for the whole sequence into scratch ----
    @pl.when(qi == 0)
    def _():
        x_full = x_ref[0].astype(f32)                              # (T, D)
        xn = layernorm(x_full, ln1_s_ref, ln1_b_ref).astype(bf16)  # (T, D) bf16
        xn_scr[...] = xn
        k = jnp.dot(xn, wk_ref[...], preferred_element_type=f32)   # (T, D) f32
        v = jnp.dot(xn, wv_ref[...], preferred_element_type=f32)
        k_scr[...] = k.reshape(T, H, hd).transpose(1, 0, 2).astype(bf16)  # (H,T,hd)
        v_scr[...] = v.reshape(T, H, hd).transpose(1, 0, 2).astype(bf16)

    # ---------------- attention branch (one query tile) ----------------
    q0 = pl.multiple_of(qi * tq, tq)
    xq = x_ref[0, pl.ds(q0, tq), :].astype(f32)                    # (tq, D) for residual
    xqn = xn_scr[pl.ds(q0, tq), :]                                 # (tq, D) bf16, cached LN

    inv_sqrt_hd = f32(1.0 / (hd ** 0.5))
    q = jnp.dot(xqn, wq_ref[...], preferred_element_type=f32)
    # fold 1/sqrt(hd) into q (tq, D) instead of scaling the (H, tq, T) scores
    q = (q * inv_sqrt_hd).reshape(tq, H, hd).transpose(1, 0, 2).astype(bf16)  # (H,tq,hd)

    # batched-over-heads score matmul on the MXU
    s = jnp.einsum('hqd,hkd->hqk', q, k_scr[...],
                   preferred_element_type=f32)                     # (H, tq, T) f32

    # causal mask, block-local iota, large finite negative instead of -inf
    row = q0 + lax.broadcasted_iota(jnp.int32, (tq, T), 0)
    col = lax.broadcasted_iota(jnp.int32, (tq, T), 1)
    s = jnp.where((col > row)[None, :, :], f32(-1e30), s)

    m = jnp.max(s, axis=-1, keepdims=True)
    p = jnp.exp(s - m)
    p = p * pl.reciprocal(jnp.sum(p, axis=-1, keepdims=True), approx=True)

    ctx = jnp.einsum('hqk,hkd->hqd', p.astype(bf16), v_scr[...],
                     preferred_element_type=f32)                   # (H, tq, hd)
    ctx = ctx.transpose(1, 0, 2).reshape(tq, D)                    # (tq, D) f32

    attn = jnp.dot(ctx.astype(bf16), wo_ref[...],
                   preferred_element_type=f32) + bo_ref[0]
    # TODO(synk): attention-weight dropout & drop_shortcut are identity (drop_rate=0 / eval).
    h1 = attn + xq                                                 # residual 1

    # ---------------- feed-forward branch ----------------
    hn = layernorm(h1, ln2_s_ref, ln2_b_ref)
    f = jnp.dot(hn.astype(bf16), w1_ref[...], preferred_element_type=f32) + b1_ref[0]
    f = gelu(f)
    f = jnp.dot(f.astype(bf16), w2_ref[...], preferred_element_type=f32) + b2_ref[0]

    o_ref[0] = (f + h1).astype(o_ref.dtype)                        # residual 2
    # TODO(synk): for very long T, add a KV-block online-softmax loop so the
    # (H, tq, T) score tile is also bounded independently of T.


def transformer_block(x, params, *, num_heads, q_tile=128):
    """params is the ordered f32 list matching the kernel signature."""
    B, T, D = x.shape
    assert D % num_heads == 0
    tq = min(q_tile, T)
    assert T % tq == 0, "sequence length must be divisible by the query tile"
    n_q = T // tq
    hd = D // num_heads

    (ln1_s, ln1_b, wq, wk, wv, wo, bo, ln2_s, ln2_b, w1, b1, w2, b2) = params
    bf16 = jnp.bfloat16
    # big matmul weights in bf16 (MXU-native, half the DMA bytes); LN params and
    # biases stay f32 for the VPU/EUP elementwise path.
    kernel_params = [ln1_s, ln1_b,
                     wq.astype(bf16), wk.astype(bf16), wv.astype(bf16),
                     wo.astype(bf16), bo,
                     ln2_s, ln2_b,
                     w1.astype(bf16), b1, w2.astype(bf16), b2]

    # whole-array VMEM residence for weights/biases: no per-step pipelining and
    # no double buffering of the (grid-invariant) weight set.
    vmem_spec = pl.BlockSpec(memory_space=pltpu.MemorySpace.VMEM)

    kernel = functools.partial(transformer_block_kernel, num_heads=num_heads)
    return pl.pallas_call(
        kernel,
        out_shape=jax.ShapeDtypeStruct((B, T, D), x.dtype),
        grid=(B, n_q),
        in_specs=[pl.BlockSpec((1, T, D), lambda b, qi: (b, 0, 0))]
                 + [vmem_spec] * len(kernel_params),
        out_specs=pl.BlockSpec((1, tq, D), lambda b, qi: (b, qi, 0)),
        scratch_shapes=[pltpu.VMEM((num_heads, T, hd), bf16),   # K (per batch elem)
                        pltpu.VMEM((num_heads, T, hd), bf16),   # V (per batch elem)
                        pltpu.VMEM((T, D), bf16)],              # LN1(x) cache
        compiler_params=pltpu.CompilerParams(
            # batch axis parallel (megacore / 2-TC); query-tile axis arbitrary
            # because the K/V/LN scratch is carried across query tiles of a batch.
            dimension_semantics=("parallel", "arbitrary"),
            vmem_limit_bytes=48 * 1024 * 1024),
    )(x, *kernel_params)


def init_params(key, emb_dim):
    """Deterministic parameter init. Linear weights are (in, out), f32."""
    D, H4 = emb_dim, 4 * emb_dim
    keys = jax.random.split(key, 6)
    scale = 0.02
    ln1_s = jnp.ones((1, D), jnp.float32)
    ln1_b = jnp.zeros((1, D), jnp.float32)
    wq = scale * jax.random.normal(keys[0], (D, D), jnp.float32)
    wk = scale * jax.random.normal(keys[1], (D, D), jnp.float32)
    wv = scale * jax.random.normal(keys[2], (D, D), jnp.float32)
    wo = scale * jax.random.normal(keys[3], (D, D), jnp.float32)
    bo = jnp.zeros((1, D), jnp.float32)
    ln2_s = jnp.ones((1, D), jnp.float32)
    ln2_b = jnp.zeros((1, D), jnp.float32)
    w1 = scale * jax.random.normal(keys[4], (D, H4), jnp.float32)
    b1 = jnp.zeros((1, H4), jnp.float32)
    w2 = scale * jax.random.normal(keys[5], (H4, D), jnp.float32)
    b2 = jnp.zeros((1, D), jnp.float32)
    return [ln1_s, ln1_b, wq, wk, wv, wo, bo, ln2_s, ln2_b, w1, b1, w2, b2]


def reference_block(x, params, *, num_heads):
    """Pure-JAX f32 reference reproducing the PyTorch forward (sanity check)."""
    (ln1_s, ln1_b, wq, wk, wv, wo, bo, ln2_s, ln2_b, w1, b1, w2, b2) = params
    eps = 1e-5

    def ln(z, s, b):
        m = z.mean(-1, keepdims=True)
        v = ((z - m) ** 2).mean(-1, keepdims=True)
        return (z - m) / jnp.sqrt(v + eps) * s[0] + b[0]

    B, T, D = x.shape
    hd = D // num_heads
    xn = ln(x, ln1_s, ln1_b)
    q = (xn @ wq).reshape(B, T, num_heads, hd).transpose(0, 2, 1, 3)
    k = (xn @ wk).reshape(B, T, num_heads, hd).transpose(0, 2, 1, 3)
    v = (xn @ wv).reshape(B, T, num_heads, hd).transpose(0, 2, 1, 3)
    s = jnp.einsum("bhqd,bhkd->bhqk", q, k)
    mask = jnp.triu(jnp.ones((T, T), bool), 1)
    s = jnp.where(mask, -jnp.inf, s)
    p = jax.nn.softmax(s / jnp.sqrt(jnp.float32(hd)), axis=-1)
    ctx = jnp.einsum("bhqk,bhkd->bhqd", p, v).transpose(0, 2, 1, 3).reshape(B, T, D)
    h1 = ctx @ wo + bo[0] + x
    hn = ln(h1, ln2_s, ln2_b)
    f = hn @ w1 + b1[0]
    f = 0.5 * f * (1 + jnp.tanh(jnp.sqrt(2.0 / jnp.pi) * (f + 0.044715 * f ** 3)))
    return f @ w2 + b2[0] + h1


if __name__ == "__main__":
    config = dict(emb_dim=32, context_length=8, n_heads=4, drop_rate=0.0, qkv_bias=False)
    B, T, D = 2, config["context_length"], config["emb_dim"]

    key = jax.random.PRNGKey(0)
    kx, kp = jax.random.split(key)
    x = jax.random.normal(kx, (B, T, D), jnp.float32)
    params = init_params(kp, D)

    out = transformer_block(x, params, num_heads=config["n_heads"])
    out = jax.block_until_ready(out)

    ref = reference_block(x, params, num_heads=config["n_heads"])
    assert out.shape == (B, T, D)
    # tolerance loosened vs the f32 reference because matmuls run in bf16
    max_err = float(jnp.max(jnp.abs(out - ref)))
    assert jnp.allclose(out, ref, atol=2e-2, rtol=2e-2), f"mismatch vs reference (max abs err {max_err})"

    print("KERNEL_OK")
</pallas_src>

<mosaic_0001>
module attributes {stable_mosaic.version = 11 : i64} {
  func.func @transformer_block_kernel(%arg0: i32, %arg1: i32, %arg2: memref<1x8x32xf32, #tpu.memory_space<vmem>>, %arg3: memref<1x32xf32, #tpu.memory_space<vmem>>, %arg4: memref<1x32xf32, #tpu.memory_space<vmem>>, %arg5: memref<32x32xbf16, #tpu.memory_space<vmem>>, %arg6: memref<32x32xbf16, #tpu.memory_space<vmem>>, %arg7: memref<32x32xbf16, #tpu.memory_space<vmem>>, %arg8: memref<32x32xbf16, #tpu.memory_space<vmem>>, %arg9: memref<1x32xf32, #tpu.memory_space<vmem>>, %arg10: memref<1x32xf32, #tpu.memory_space<vmem>>, %arg11: memref<1x32xf32, #tpu.memory_space<vmem>>, %arg12: memref<32x128xbf16, #tpu.memory_space<vmem>>, %arg13: memref<1x128xf32, #tpu.memory_space<vmem>>, %arg14: memref<128x32xbf16, #tpu.memory_space<vmem>>, %arg15: memref<1x32xf32, #tpu.memory_space<vmem>>, %arg16: memref<1x8x32xf32, #tpu.memory_space<vmem>>, %arg17: memref<4x8x8xbf16, #tpu.memory_space<vmem>>, %arg18: memref<4x8x8xbf16, #tpu.memory_space<vmem>>, %arg19: memref<8x32xbf16, #tpu.memory_space<vmem>>) attributes {dimension_semantics = [#tpu.dimension_semantics<parallel>, #tpu.dimension_semantics<arbitrary>], iteration_bounds = array<i64: 2, 1>, scalar_prefetch = 0 : i64, scratch_operands = 3 : i64, tpu.core_type = #tpu.core_type<tc>, window_params = [{transform_indices = @transform_0, window_bounds = array<i64: 1, 8, 32>}, {pipeline_mode = #tpu.pipeline_mode<synchronous>, transform_indices = @transform_1, window_bounds = array<i64: 1, 32>}, {pipeline_mode = #tpu.pipeline_mode<synchronous>, transform_indices = @transform_2, window_bounds = array<i64: 1, 32>}, {pipeline_mode = #tpu.pipeline_mode<synchronous>, transform_indices = @transform_3, window_bounds = array<i64: 32, 32>}, {pipeline_mode = #tpu.pipeline_mode<synchronous>, transform_indices = @transform_4, window_bounds = array<i64: 32, 32>}, {pipeline_mode = #tpu.pipeline_mode<synchronous>, transform_indices = @transform_5, window_bounds = array<i64: 32, 32>}, {pipeline_mode = #tpu.pipeline_mode<synchronous>, transform_indices = @transform_6, window_bounds = array<i64: 32, 32>}, {pipeline_mode = #tpu.pipeline_mode<synchronous>, transform_indices = @transform_7, window_bounds = array<i64: 1, 32>}, {pipeline_mode = #tpu.pipeline_mode<synchronous>, transform_indices = @transform_8, window_bounds = array<i64: 1, 32>}, {pipeline_mode = #tpu.pipeline_mode<synchronous>, transform_indices = @transform_9, window_bounds = array<i64: 1, 32>}, {pipeline_mode = #tpu.pipeline_mode<synchronous>, transform_indices = @transform_10, window_bounds = array<i64: 32, 128>}, {pipeline_mode = #tpu.pipeline_mode<synchronous>, transform_indices = @transform_11, window_bounds = array<i64: 1, 128>}, {pipeline_mode = #tpu.pipeline_mode<synchronous>, transform_indices = @transform_12, window_bounds = array<i64: 128, 32>}, {pipeline_mode = #tpu.pipeline_mode<synchronous>, transform_indices = @transform_13, window_bounds = array<i64: 1, 32>}, {transform_indices = @transform_14, window_bounds = array<i64: 1, 8, 32>}]} {
    %c0_i32 = arith.constant 0 : i32
    %0 = arith.cmpi eq, %arg1, %c0_i32 : i32
    %1 = arith.extui %0 : i1 to i32
    %cst = arith.constant 9.99999974E-6 : f32
    %c0_i32_0 = arith.constant 0 : i32
    %2 = arith.cmpi ne, %1, %c0_i32_0 : i32
    scf.if %2 {
      %c0_49 = arith.constant 0 : index
      %c0_50 = arith.constant 0 : index
      %c0_51 = arith.constant 0 : index
      %114 = vector.load %arg2[%c0_49, %c0_50, %c0_51] : memref<1x8x32xf32, #tpu.memory_space<vmem>>, vector<1x8x32xf32>
      %115 = vector.shape_cast %114 : vector<1x8x32xf32> to vector<8x32xf32>
      %cst_52 = arith.constant dense<0.000000e+00> : vector<8xf32>
      %116 = vector.multi_reduction <add>, %115, %cst_52 [1] : vector<8x32xf32> to vector<8xf32>
      %117 = vector.shape_cast %116 : vector<8xf32> to vector<8x1xf32>
      %cst_53 = arith.constant 3.200000e+01 : f32
      %118 = vector.broadcast %cst_53 : f32 to vector<8x1xf32>
      %119 = arith.divf %117, %118 : vector<8x1xf32>
      %120 = vector.broadcast %119 : vector<8x1xf32> to vector<8x32xf32>
      %121 = arith.subf %115, %120 : vector<8x32xf32>
      %122 = arith.mulf %121, %121 : vector<8x32xf32>
      %cst_54 = arith.constant dense<0.000000e+00> : vector<8xf32>
      %123 = vector.multi_reduction <add>, %122, %cst_54 [1] : vector<8x32xf32> to vector<8xf32>
      %124 = vector.shape_cast %123 : vector<8xf32> to vector<8x1xf32>
      %cst_55 = arith.constant 3.200000e+01 : f32
      %125 = vector.broadcast %cst_55 : f32 to vector<8x1xf32>
      %126 = arith.divf %124, %125 : vector<8x1xf32>
      %127 = vector.broadcast %119 : vector<8x1xf32> to vector<8x32xf32>
      %128 = arith.subf %115, %127 : vector<8x32xf32>
      %129 = vector.broadcast %cst : f32 to vector<8x1xf32>
      %130 = arith.addf %126, %129 : vector<8x1xf32>
      %131 = math.rsqrt %130 : vector<8x1xf32>
      %132 = vector.broadcast %131 : vector<8x1xf32> to vector<8x32xf32>
      %133 = arith.mulf %128, %132 : vector<8x32xf32>
      %c0_56 = arith.constant 0 : index
      %c0_57 = arith.constant 0 : index
      %134 = vector.load %arg3[%c0_56, %c0_57] : memref<1x32xf32, #tpu.memory_space<vmem>>, vector<1x32xf32>
      %135 = vector.shape_cast %134 : vector<1x32xf32> to vector<32xf32>
      %136 = vector.shape_cast %135 : vector<32xf32> to vector<1x32xf32>
      %137 = vector.broadcast %136 : vector<1x32xf32> to vector<8x32xf32>
      %138 = arith.mulf %133, %137 : vector<8x32xf32>
      %c0_58 = arith.constant 0 : index
      %c0_59 = arith.constant 0 : index
      %139 = vector.load %arg4[%c0_58, %c0_59] : memref<1x32xf32, #tpu.memory_space<vmem>>, vector<1x32xf32>
      %140 = vector.shape_cast %139 : vector<1x32xf32> to vector<32xf32>
      %141 = vector.shape_cast %140 : vector<32xf32> to vector<1x32xf32>
      %142 = vector.broadcast %141 : vector<1x32xf32> to vector<8x32xf32>
      %143 = arith.addf %138, %142 : vector<8x32xf32>
      %144 = arith.truncf %143 : vector<8x32xf32> to vector<8x32xbf16>
      %c0_60 = arith.constant 0 : index
      %c0_61 = arith.constant 0 : index
      %145 = vector.load %arg19[%c0_60, %c0_61] : memref<8x32xbf16, #tpu.memory_space<vmem>>, vector<8x32xbf16>
      tpu.vector_store %arg19[%c0_60, %c0_61], %144 {strides = array<i32>} : memref<8x32xbf16, #tpu.memory_space<vmem>>, vector<8x32xbf16>,
      %c0_62 = arith.constant 0 : index
      %c0_63 = arith.constant 0 : index
      %146 = vector.load %arg6[%c0_62, %c0_63] : memref<32x32xbf16, #tpu.memory_space<vmem>>, vector<32x32xbf16>
      %cst_64 = arith.constant dense<0.000000e+00> : vector<8x32xf32>
      %147 = tpu.matmul %144, %146, %cst_64 {dimension_numbers = #tpu.dot_dimension_numbers<[1], [0], [0], [1], [0, 0, 1, 1], [], []>} : vector<8x32xbf16>, vector<32x32xbf16>, vector<8x32xf32> -> vector<8x32xf32>
      %c0_65 = arith.constant 0 : index
      %c0_66 = arith.constant 0 : index
      %148 = vector.load %arg7[%c0_65, %c0_66] : memref<32x32xbf16, #tpu.memory_space<vmem>>, vector<32x32xbf16>
      %cst_67 = arith.constant dense<0.000000e+00> : vector<8x32xf32>
      %149 = tpu.matmul %144, %148, %cst_67 {dimension_numbers = #tpu.dot_dimension_numbers<[1], [0], [0], [1], [0, 0, 1, 1], [], []>} : vector<8x32xbf16>, vector<32x32xbf16>, vector<8x32xf32> -> vector<8x32xf32>
      %150 = vector.shape_cast %147 : vector<8x32xf32> to vector<8x4x8xf32>
      %151 = tpu.transpose %150, [1, 0, 2] : vector<8x4x8xf32> -> vector<4x8x8xf32>
      %152 = arith.truncf %151 : vector<4x8x8xf32> to vector<4x8x8xbf16>
      %c0_68 = arith.constant 0 : index
      %c0_69 = arith.constant 0 : index
      %c0_70 = arith.constant 0 : index
      %153 = vector.load %arg17[%c0_68, %c0_69, %c0_70] : memref<4x8x8xbf16, #tpu.memory_space<vmem>>, vector<4x8x8xbf16>
      tpu.vector_store %arg17[%c0_68, %c0_69, %c0_70], %152 {strides = array<i32>} : memref<4x8x8xbf16, #tpu.memory_space<vmem>>, vector<4x8x8xbf16>,
      %154 = vector.shape_cast %149 : vector<8x32xf32> to vector<8x4x8xf32>
      %155 = tpu.transpose %154, [1, 0, 2] : vector<8x4x8xf32> -> vector<4x8x8xf32>
      %156 = arith.truncf %155 : vector<4x8x8xf32> to vector<4x8x8xbf16>
      %c0_71 = arith.constant 0 : index
      %c0_72 = arith.constant 0 : index
      %c0_73 = arith.constant 0 : index
      %157 = vector.load %arg18[%c0_71, %c0_72, %c0_73] : memref<4x8x8xbf16, #tpu.memory_space<vmem>>, vector<4x8x8xbf16>
      tpu.vector_store %arg18[%c0_71, %c0_72, %c0_73], %156 {strides = array<i32>} : memref<4x8x8xbf16, #tpu.memory_space<vmem>>, vector<4x8x8xbf16>,
    } else {
    }
    %c8_i32 = arith.constant 8 : i32
    %3 = arith.muli %arg1, %c8_i32 : i32
    %4 = tpu.assume_multiple %3, 8 : i32
    %c0 = arith.constant 0 : index
    %5 = arith.index_cast %4 : i32 to index
    %c0_1 = arith.constant 0 : index
    %6 = vector.load %arg2[%c0, %5, %c0_1] : memref<1x8x32xf32, #tpu.memory_space<vmem>>, vector<1x8x32xf32>
    %7 = vector.shape_cast %6 : vector<1x8x32xf32> to vector<8x32xf32>
    %8 = arith.index_cast %4 : i32 to index
    %c0_2 = arith.constant 0 : index
    %9 = vector.load %arg19[%8, %c0_2] : memref<8x32xbf16, #tpu.memory_space<vmem>>, vector<8x32xbf16>
    %c0_3 = arith.constant 0 : index
    %c0_4 = arith.constant 0 : index
    %10 = vector.load %arg5[%c0_3, %c0_4] : memref<32x32xbf16, #tpu.memory_space<vmem>>, vector<32x32xbf16>
    %cst_5 = arith.constant dense<0.000000e+00> : vector<8x32xf32>
    %11 = tpu.matmul %9, %10, %cst_5 {dimension_numbers = #tpu.dot_dimension_numbers<[1], [0], [0], [1], [0, 0, 1, 1], [], []>} : vector<8x32xbf16>, vector<32x32xbf16>, vector<8x32xf32> -> vector<8x32xf32>
    %cst_6 = arith.constant 0.353553385 : f32
    %12 = vector.broadcast %cst_6 : f32 to vector<8x32xf32>
    %13 = arith.mulf %11, %12 : vector<8x32xf32>
    %14 = vector.shape_cast %13 : vector<8x32xf32> to vector<8x4x8xf32>
    %15 = tpu.transpose %14, [1, 0, 2] : vector<8x4x8xf32> -> vector<4x8x8xf32>
    %16 = arith.truncf %15 : vector<4x8x8xf32> to vector<4x8x8xbf16>
    %c0_7 = arith.constant 0 : index
    %c0_8 = arith.constant 0 : index
    %c0_9 = arith.constant 0 : index
    %17 = vector.load %arg17[%c0_7, %c0_8, %c0_9] : memref<4x8x8xbf16, #tpu.memory_space<vmem>>, vector<4x8x8xbf16>
    "tpu.trace_start"() <{level = 10 : i32, message = "hqd,hkd->hqk"}> : () -> ()
    %cst_10 = arith.constant dense<0.000000e+00> : vector<4x8x8xf32>
    %18 = tpu.matmul %16, %17, %cst_10 {dimension_numbers = #tpu.dot_dimension_numbers<[2], [2], [1], [1], [0, 0, 0, 1, 1, 1], [0], [0]>} : vector<4x8x8xbf16>, vector<4x8x8xbf16>, vector<4x8x8xf32> -> vector<4x8x8xf32>
    "tpu.trace_stop"() : () -> ()
    %19 = tpu.iota {dimensions = array<i32: 0>} : vector<8x8xi32>
    %20 = vector.broadcast %4 : i32 to vector<8x8xi32>
    %21 = arith.addi %20, %19 : vector<8x8xi32>
    %22 = tpu.iota {dimensions = array<i32: 1>} : vector<8x8xi32>
    %23 = arith.cmpi sgt, %22, %21 : vector<8x8xi32>
    %24 = vector.shape_cast %23 : vector<8x8xi1> to vector<1x8x8xi1>
    %cst_11 = arith.constant -1.000000e+30 : f32
    %25 = vector.shape_cast %24 : vector<1x8x8xi1> to vector<1x8x8xi1>
    %26 = vector.broadcast %25 : vector<1x8x8xi1> to vector<4x8x8xi1>
    %27 = vector.broadcast %cst_11 : f32 to vector<4x8x8xf32>
    %28 = arith.select %26, %27, %18 : vector<4x8x8xi1>, vector<4x8x8xf32>
    %cst_12 = arith.constant dense<0xFF800000> : vector<4x8xf32>
    %29 = vector.multi_reduction <maximumf>, %28, %cst_12 [2] : vector<4x8x8xf32> to vector<4x8xf32>
    %30 = vector.shape_cast %29 : vector<4x8xf32> to vector<4x8x1xf32>
    %31 = vector.broadcast %30 : vector<4x8x1xf32> to vector<4x8x8xf32>
    %32 = arith.subf %28, %31 : vector<4x8x8xf32>
    %33 = math.exp %32 : vector<4x8x8xf32>
    %cst_13 = arith.constant dense<0.000000e+00> : vector<4x8xf32>
    %34 = vector.multi_reduction <add>, %33, %cst_13 [2] : vector<4x8x8xf32> to vector<4x8xf32>
    %35 = vector.shape_cast %34 : vector<4x8xf32> to vector<4x8x1xf32>
    %36 = tpu.reciprocal %35 {approx = true} : vector<4x8x1xf32> -> vector<4x8x1xf32>
    %37 = vector.broadcast %36 : vector<4x8x1xf32> to vector<4x8x8xf32>
    %38 = arith.mulf %33, %37 : vector<4x8x8xf32>
    %39 = arith.truncf %38 : vector<4x8x8xf32> to vector<4x8x8xbf16>
    %c0_14 = arith.constant 0 : index
    %c0_15 = arith.constant 0 : index
    %c0_16 = arith.constant 0 : index
    %40 = vector.load %arg18[%c0_14, %c0_15, %c0_16] : memref<4x8x8xbf16, #tpu.memory_space<vmem>>, vector<4x8x8xbf16>
    "tpu.trace_start"() <{level = 10 : i32, message = "hqk,hkd->hqd"}> : () -> ()
    %cst_17 = arith.constant dense<0.000000e+00> : vector<4x8x8xf32>
    %41 = tpu.matmul %39, %40, %cst_17 {dimension_numbers = #tpu.dot_dimension_numbers<[2], [1], [1], [2], [0, 0, 0, 1, 1, 2], [0], [0]>} : vector<4x8x8xbf16>, vector<4x8x8xbf16>, vector<4x8x8xf32> -> vector<4x8x8xf32>
    "tpu.trace_stop"() : () -> ()
    %42 = tpu.transpose %41, [1, 0, 2] : vector<4x8x8xf32> -> vector<8x4x8xf32>
    %43 = vector.shape_cast %42 : vector<8x4x8xf32> to vector<8x32xf32>
    %44 = arith.truncf %43 : vector<8x32xf32> to vector<8x32xbf16>
    %c0_18 = arith.constant 0 : index
    %c0_19 = arith.constant 0 : index
    %45 = vector.load %arg8[%c0_18, %c0_19] : memref<32x32xbf16, #tpu.memory_space<vmem>>, vector<32x32xbf16>
    %cst_20 = arith.constant dense<0.000000e+00> : vector<8x32xf32>
    %46 = tpu.matmul %44, %45, %cst_20 {dimension_numbers = #tpu.dot_dimension_numbers<[1], [0], [0], [1], [0, 0, 1, 1], [], []>} : vector<8x32xbf16>, vector<32x32xbf16>, vector<8x32xf32> -> vector<8x32xf32>
    %c0_21 = arith.constant 0 : index
    %c0_22 = arith.constant 0 : index
    %47 = vector.load %arg9[%c0_21, %c0_22] : memref<1x32xf32, #tpu.memory_space<vmem>>, vector<1x32xf32>
    %48 = vector.shape_cast %47 : vector<1x32xf32> to vector<32xf32>
    %49 = vector.shape_cast %48 : vector<32xf32> to vector<1x32xf32>
    %50 = vector.broadcast %49 : vector<1x32xf32> to vector<8x32xf32>
    %51 = arith.addf %46, %50 : vector<8x32xf32>
    %52 = arith.addf %51, %7 : vector<8x32xf32>
    %cst_23 = arith.constant dense<0.000000e+00> : vector<8xf32>
    %53 = vector.multi_reduction <add>, %52, %cst_23 [1] : vector<8x32xf32> to vector<8xf32>
    %54 = vector.shape_cast %53 : vector<8xf32> to vector<8x1xf32>
    %cst_24 = arith.constant 3.200000e+01 : f32
    %55 = vector.broadcast %cst_24 : f32 to vector<8x1xf32>
    %56 = arith.divf %54, %55 : vector<8x1xf32>
    %57 = vector.broadcast %56 : vector<8x1xf32> to vector<8x32xf32>
    %58 = arith.subf %52, %57 : vector<8x32xf32>
    %59 = arith.mulf %58, %58 : vector<8x32xf32>
    %cst_25 = arith.constant dense<0.000000e+00> : vector<8xf32>
    %60 = vector.multi_reduction <add>, %59, %cst_25 [1] : vector<8x32xf32> to vector<8xf32>
    %61 = vector.shape_cast %60 : vector<8xf32> to vector<8x1xf32>
    %cst_26 = arith.constant 3.200000e+01 : f32
    %62 = vector.broadcast %cst_26 : f32 to vector<8x1xf32>
    %63 = arith.divf %61, %62 : vector<8x1xf32>
    %64 = vector.broadcast %56 : vector<8x1xf32> to vector<8x32xf32>
    %65 = arith.subf %52, %64 : vector<8x32xf32>
    %cst_27 = arith.constant 9.99999974E-6 : f32
    %66 = vector.broadcast %cst_27 : f32 to vector<8x1xf32>
    %67 = arith.addf %63, %66 : vector<8x1xf32>
    %68 = math.rsqrt %67 : vector<8x1xf32>
    %69 = vector.broadcast %68 : vector<8x1xf32> to vector<8x32xf32>
    %70 = arith.mulf %65, %69 : vector<8x32xf32>
    %c0_28 = arith.constant 0 : index
    %c0_29 = arith.constant 0 : index
    %71 = vector.load %arg10[%c0_28, %c0_29] : memref<1x32xf32, #tpu.memory_space<vmem>>, vector<1x32xf32>
    %72 = vector.shape_cast %71 : vector<1x32xf32> to vector<32xf32>
    %73 = vector.shape_cast %72 : vector<32xf32> to vector<1x32xf32>
    %74 = vector.broadcast %73 : vector<1x32xf32> to vector<8x32xf32>
    %75 = arith.mulf %70, %74 : vector<8x32xf32>
    %c0_30 = arith.constant 0 : index
    %c0_31 = arith.constant 0 : index
    %76 = vector.load %arg11[%c0_30, %c0_31] : memref<1x32xf32, #tpu.memory_space<vmem>>, vector<1x32xf32>
    %77 = vector.shape_cast %76 : vector<1x32xf32> to vector<32xf32>
    %78 = vector.shape_cast %77 : vector<32xf32> to vector<1x32xf32>
    %79 = vector.broadcast %78 : vector<1x32xf32> to vector<8x32xf32>
    %80 = arith.addf %75, %79 : vector<8x32xf32>
    %81 = arith.truncf %80 : vector<8x32xf32> to vector<8x32xbf16>
    %c0_32 = arith.constant 0 : index
    %c0_33 = arith.constant 0 : index
    %82 = vector.load %arg12[%c0_32, %c0_33] : memref<32x128xbf16, #tpu.memory_space<vmem>>, vector<32x128xbf16>
    %cst_34 = arith.constant dense<0.000000e+00> : vector<8x128xf32>
    %83 = tpu.matmul %81, %82, %cst_34 {dimension_numbers = #tpu.dot_dimension_numbers<[1], [0], [0], [1], [0, 0, 1, 1], [], []>} : vector<8x32xbf16>, vector<32x128xbf16>, vector<8x128xf32> -> vector<8x128xf32>
    %c0_35 = arith.constant 0 : index
    %c0_36 = arith.constant 0 : index
    %84 = vector.load %arg13[%c0_35, %c0_36] : memref<1x128xf32, #tpu.memory_space<vmem>>, vector<1x128xf32>
    %85 = vector.shape_cast %84 : vector<1x128xf32> to vector<128xf32>
    %86 = vector.shape_cast %85 : vector<128xf32> to vector<1x128xf32>
    %87 = vector.broadcast %86 : vector<1x128xf32> to vector<8x128xf32>
    %88 = arith.addf %83, %87 : vector<8x128xf32>
    %cst_37 = arith.constant 5.000000e-01 : f32
    %89 = vector.broadcast %cst_37 : f32 to vector<8x128xf32>
    %90 = arith.mulf %89, %88 : vector<8x128xf32>
    %91 = arith.mulf %88, %88 : vector<8x128xf32>
    %92 = arith.mulf %91, %88 : vector<8x128xf32>
    %cst_38 = arith.constant 4.471500e-02 : f32
    %93 = vector.broadcast %cst_38 : f32 to vector<8x128xf32>
    %94 = arith.mulf %93, %92 : vector<8x128xf32>
    %95 = arith.addf %88, %94 : vector<8x128xf32>
    %cst_39 = arith.constant 0.797884583 : f32
    %96 = vector.broadcast %cst_39 : f32 to vector<8x128xf32>
    %97 = arith.mulf %96, %95 : vector<8x128xf32>
    %98 = math.tanh %97 : vector<8x128xf32>
    %cst_40 = arith.constant 1.000000e+00 : f32
    %99 = vector.broadcast %cst_40 : f32 to vector<8x128xf32>
    %100 = arith.addf %99, %98 : vector<8x128xf32>
    %101 = arith.mulf %90, %100 : vector<8x128xf32>
    %102 = arith.truncf %101 : vector<8x128xf32> to vector<8x128xbf16>
    %c0_41 = arith.constant 0 : index
    %c0_42 = arith.constant 0 : index
    %103 = vector.load %arg14[%c0_41, %c0_42] : memref<128x32xbf16, #tpu.memory_space<vmem>>, vector<128x32xbf16>
    %cst_43 = arith.constant dense<0.000000e+00> : vector<8x32xf32>
    %104 = tpu.matmul %102, %103, %cst_43 {dimension_numbers = #tpu.dot_dimension_numbers<[1], [0], [0], [1], [0, 0, 1, 1], [], []>} : vector<8x128xbf16>, vector<128x32xbf16>, vector<8x32xf32> -> vector<8x32xf32>
    %c0_44 = arith.constant 0 : index
    %c0_45 = arith.constant 0 : index
    %105 = vector.load %arg15[%c0_44, %c0_45] : memref<1x32xf32, #tpu.memory_space<vmem>>, vector<1x32xf32>
    %106 = vector.shape_cast %105 : vector<1x32xf32> to vector<32xf32>
    %107 = vector.shape_cast %106 : vector<32xf32> to vector<1x32xf32>
    %108 = vector.broadcast %107 : vector<1x32xf32> to vector<8x32xf32>
    %109 = arith.addf %104, %108 : vector<8x32xf32>
    %110 = arith.addf %109, %52 : vector<8x32xf32>
    %c0_46 = arith.constant 0 : index
    %c0_47 = arith.constant 0 : index
    %c0_48 = arith.constant 0 : index
    %111 = vector.load %arg16[%c0_46, %c0_47, %c0_48] : memref<1x8x32xf32, #tpu.memory_space<vmem>>, vector<1x8x32xf32>
    %112 = vector.shape_cast %111 : vector<1x8x32xf32> to vector<8x32xf32>
    %113 = vector.shape_cast %110 : vector<8x32xf32> to vector<1x8x32xf32>
    tpu.vector_store %arg16[%c0_46, %c0_47, %c0_48], %113 {strides = array<i32>} : memref<1x8x32xf32, #tpu.memory_space<vmem>>, vector<1x8x32xf32>,
    return
  }
  func.func @transform_0(%arg0: i32, %arg1: i32) -> (i32, i32, i32) {
    %c0_i32 = arith.constant 0 : i32
    %c0_i32_0 = arith.constant 0 : i32
    %c0_i32_1 = arith.constant 0 : i32
    return %arg0, %c0_i32, %c0_i32_0 : i32, i32, i32
  }
  func.func @transform_1(%arg0: i32, %arg1: i32) -> (i32, i32) {
    %c0_i32 = arith.constant 0 : i32
    %c0_i32_0 = arith.constant 0 : i32
    %c0_i32_1 = arith.constant 0 : i32
    return %c0_i32, %c0_i32_0 : i32, i32
  }
  func.func @transform_2(%arg0: i32, %arg1: i32) -> (i32, i32) {
    %c0_i32 = arith.constant 0 : i32
    %c0_i32_0 = arith.constant 0 : i32
    %c0_i32_1 = arith.constant 0 : i32
    return %c0_i32, %c0_i32_0 : i32, i32
  }
  func.func @transform_3(%arg0: i32, %arg1: i32) -> (i32, i32) {
    %c0_i32 = arith.constant 0 : i32
    %c0_i32_0 = arith.constant 0 : i32
    %c0_i32_1 = arith.constant 0 : i32
    return %c0_i32, %c0_i32_0 : i32, i32
  }
  func.func @transform_4(%arg0: i32, %arg1: i32) -> (i32, i32) {
    %c0_i32 = arith.constant 0 : i32
    %c0_i32_0 = arith.constant 0 : i32
    %c0_i32_1 = arith.constant 0 : i32
    return %c0_i32, %c0_i32_0 : i32, i32
  }
  func.func @transform_5(%arg0: i32, %arg1: i32) -> (i32, i32) {
    %c0_i32 = arith.constant 0 : i32
    %c0_i32_0 = arith.constant 0 : i32
    %c0_i32_1 = arith.constant 0 : i32
    return %c0_i32, %c0_i32_0 : i32, i32
  }
  func.func @transform_6(%arg0: i32, %arg1: i32) -> (i32, i32) {
    %c0_i32 = arith.constant 0 : i32
    %c0_i32_0 = arith.constant 0 : i32
    %c0_i32_1 = arith.constant 0 : i32
    return %c0_i32, %c0_i32_0 : i32, i32
  }
  func.func @transform_7(%arg0: i32, %arg1: i32) -> (i32, i32) {
    %c0_i32 = arith.constant 0 : i32
    %c0_i32_0 = arith.constant 0 : i32
    %c0_i32_1 = arith.constant 0 : i32
    return %c0_i32, %c0_i32_0 : i32, i32
  }
  func.func @transform_8(%arg0: i32, %arg1: i32) -> (i32, i32) {
    %c0_i32 = arith.constant 0 : i32
    %c0_i32_0 = arith.constant 0 : i32
    %c0_i32_1 = arith.constant 0 : i32
    return %c0_i32, %c0_i32_0 : i32, i32
  }
  func.func @transform_9(%arg0: i32, %arg1: i32) -> (i32, i32) {
    %c0_i32 = arith.constant 0 : i32
    %c0_i32_0 = arith.constant 0 : i32
    %c0_i32_1 = arith.constant 0 : i32
    return %c0_i32, %c0_i32_0 : i32, i32
  }
  func.func @transform_10(%arg0: i32, %arg1: i32) -> (i32, i32) {
    %c0_i32 = arith.constant 0 : i32
    %c0_i32_0 = arith.constant 0 : i32
    %c0_i32_1 = arith.constant 0 : i32
    return %c0_i32, %c0_i32_0 : i32, i32
  }
  func.func @transform_11(%arg0: i32, %arg1: i32) -> (i32, i32) {
    %c0_i32 = arith.constant 0 : i32
    %c0_i32_0 = arith.constant 0 : i32
    %c0_i32_1 = arith.constant 0 : i32
    return %c0_i32, %c0_i32_0 : i32, i32
  }
  func.func @transform_12(%arg0: i32, %arg1: i32) -> (i32, i32) {
    %c0_i32 = arith.constant 0 : i32
    %c0_i32_0 = arith.constant 0 : i32
    %c0_i32_1 = arith.constant 0 : i32
    return %c0_i32, %c0_i32_0 : i32, i32
  }
  func.func @transform_13(%arg0: i32, %arg1: i32) -> (i32, i32) {
    %c0_i32 = arith.constant 0 : i32
    %c0_i32_0 = arith.constant 0 : i32
    %c0_i32_1 = arith.constant 0 : i32
    return %c0_i32, %c0_i32_0 : i32, i32
  }
  func.func @transform_14(%arg0: i32, %arg1: i32) -> (i32, i32, i32) {
    %c0_i32 = arith.constant 0 : i32
    %c0_i32_0 = arith.constant 0 : i32
    return %arg0, %arg1, %c0_i32 : i32, i32, i32
  }
}

</mosaic_0001>

<bundles_post_ra>
// kernel: tpu_custom_call.1
= control target key start
LH: loop header
LB: loop body
LE: loop exit
PB: predicated region body
PF: predicated region fallthrough
CT: control target
= control target key end

     0   :  { %19 = vsyncpa [#allocation6], 0  ;;  %s3192_s0 = inlined_call_operand.vmem [shape: f32[2,8,32], index: 0, kind: input, shape index: {}]   ;;  %s3193_s1 = inlined_call_operand.vmem [shape: f32[1,32], index: 1, kind: input, shape index: {}]   ;;  %s3194_s2 = inlined_call_operand.vmem [shape: f32[1,32], index: 2, kind: input, shape index: {}]   ;;  %s3195_s3 = inlined_call_operand.vmem [shape: bf16[32,32], index: 3, kind: input, shape index: {}]   ;;  %s3196_s4 = inlined_call_operand.vmem [shape: bf16[32,32], index: 4, kind: input, shape index: {}]   ;;  %s3197_s5 = inlined_call_operand.vmem [shape: bf16[32,32], index: 5, kind: input, shape index: {}]   ;;  %s3198_s6 = inlined_call_operand.vmem [shape: bf16[32,32], index: 6, kind: input, shape index: {}]   ;;  %s3199_s7 = inlined_call_operand.vmem [shape: f32[1,32], index: 7, kind: input, shape index: {}]   ;;  %s3200_s8 = inlined_call_operand.vmem [shape: f32[1,32], index: 8, kind: input, shape index: {}]   ;;  %s3201_s9 = inlined_call_operand.vmem [shape: f32[1,32], index: 9, kind: input, shape index: {}]   ;;  %s3202_s10 = inlined_call_operand.hbm [shape: bf16[32,128], index: 10, kind: input, shape index: {}]   ;;  %s3203_s11 = inlined_call_operand.hbm [shape: f32[1,128], index: 11, kind: input, shape index: {}]   ;;  %s3204_s12 = inlined_call_operand.vmem [shape: bf16[128,32], index: 12, kind: input, shape index: {}]   ;;  %s3205_s13 = inlined_call_operand.vmem [shape: f32[1,32], index: 13, kind: input, shape index: {}]   ;;  %s3206_s14 = inlined_call_operand.hbm [shape: f32[2,8,32], index: 14, kind: output, shape index: {}]  }
   0x1   :  { %20 = vsyncpa [#allocation9], 0 }
   0x2   :  { %21 = vsyncpa [#allocation7], 0 }
   0x3   :  { %23 = vsyncpa [#allocation7 + $0x1], 0  ;;  %s2742_s29 = smov 0   ;;  %s2744_s30 = smov 0  }
   0x4   :  { %s2746_s15 = smov 0   ;;  %s2748_s16 = smov 0  }
   0x5   :  { %s2750_s17 = smov 0   ;;  %s2752_s18 = smov 0  }
   0x6 LB: > { %3214 = sst [smem:[#allocation14_spill]] %s2630_s29  ;;  %s2177_s19 = sadd.s32 4294967295, %s2650_s18   ;;  %s2650_s18 = sphi %s2752_s18, %s29_s18   ;;  %s2646_s17 = sphi %s2750_s17, %s3233_s17   ;;  %s2642_s16 = sphi %s2748_s16, %s3232_s16   ;;  %s2638_s15 = sphi %s2746_s15, %s3231_s15   ;;  %s2634_s30 = sphi %s2744_s30, %s3235_s30   ;;  %s2630_s29 = sphi %s2742_s29, %s3234_s29  }
   0x7   : > { %3215 = sst [smem:[#allocation15_spill]] %s2638_s15  ;;  %s2178_s20 = sadd.s32 4294967294, %s2650_s18  }
   0x8   : > { %3216 = sst [smem:[#allocation16_spill]] %s2646_s17  ;;  %s41_s21 = sadd.s32 1, %s2646_s17 }
   0x9   : > { %3217 = sst [smem:[#allocation17_spill]] %s2650_s18  ;;  %s349_s22 = sadd.s32 1, %s2638_s15 }
   0xa   : > { %p43_p0 = scmp.ge.s32.totalorder %s41_s21, 2  ;;  %p359_p1 = scmp.ne.s32.totalorder %s2638_s15, %s2634_s30 }
   0xb   : > { %p360_p2 = scmp.eq.s32.totalorder %s2177_s19, 1  ;;  %p365_p3 = scmp.ne.s32.totalorder %s2634_s30, %s2630_s29 }
   0xc   : > { %s3237_s21 = smov (%p43_p0, %s41_s21), 0  ;;  %p366_p5 = scmp.eq.s32.totalorder %s2178_s20, 1 }
   0xd   : > { %3218 = sst [smem:[#allocation18_spill]] %s3237_s21  ;;  %p2782_p4 = por %p360_p2, %p359_p1 }
   0xe   : > { %s344_s24 = ssub.s32 %s2646_s17, %s3237_s21  ;;  %p2179_p6 = scmp.ge.s32.totalorder %s2650_s18, 1 }
   0xf   : > { %p347_p7 = scmp.eq.s32.totalorder %s344_s24, 0  ;;  %p2789_p8 = por %p366_p5, %p365_p3 }
  0x10   : > { %p373_p9 = scmp.lt.s32.totalorder %s2650_s18, 3  ;;  %p2801_p11 = scmp.eq.s32.totalorder %s2177_s19, 0 }
  0x11   : > { %s3220_s25 = scalar_select %p2789_p8, 1, 0 }
  0x12   : > { %s2795_s26 = scalar_select %p347_p7, %s2638_s15, %s349_s22  }
  0x13   : > { %3221 = sst [smem:[#allocation19_spill]] %s3220_s25  ;;  %p2797_p10 = pnand %p2179_p6, %p373_p9 }
  0x14   : > { %3222 = sst [smem:[#allocation20_spill]] %s2795_s26  ;;  %s2652_s20 = smov [#allocation5]  }
  0x15   : > { %p2396_p12 = pneg %p2797_p10  ;;  %s412_s24 = sshll.u32 %s2652_s20, 4  ;;  %s413_s24 = int_to_ptr.vmem [resolvable:$true] %s412_s24 }
  0x16   : > { %s2653_s22 = smov [#allocation8]   ;;  %s2525_s19 = scalar_lea.vmem %s413_s24, 256 }
  0x17   : > { %p2809_p13 = pnand %p2801_p11, %p2396_p12  ;;  %s426_s17 = sshll.u32 %s2653_s22, 4  ;;  %s427_s17 = int_to_ptr.vmem [resolvable:$true] %s426_s17 }
  0x18   : > { %p2526_p1 = scmp.ne.s32.totalorder %s413_s24, %s2525_s19  ;;  %p2533_p5 = scmp.lt.s32.totalorder %s413_s24, %s413_s24 }
  0x19   : > { %p2516_p0 = pneg %p2809_p13  ;;  %p2534_p6 = scmp.lt.s32.totalorder %s2525_s19, %s2525_s19 }
  0x1b   : > { %p2528_p2 = pnand %p2526_p1, %p2516_p0  ;;  %p2535_p7 = por %p2534_p6, %p2533_p5 }
  0x1d   : > { %p2529_p3 = pneg %p2528_p2 }
  0x1f   : > { %p2536_p9 = pnand %p2535_p7, %p2529_p3 }
  0x21   : > { %2539 = shalt.err (!%p2536_p9)
}
  0x22   : > { %s2654_s20 = smov 64   ;;  %s2655_s26 = smov 4  }
  0x23   : > { %2399 = dma.hbm_to_vmem [thread:$0]  (!%p2809_p13), %s3202_s10, 256, %s413_s24, [#allocation6], %s2654_s20, %s2654_s20, %s2655_s26  }
  0x24   : > { %s2551_s25 = scalar_lea.vmem %s427_s17, 16  ;;  %s2558_s29 = scalar_lea.vmem %s427_s17, 32 }
  0x25   : > { %p2552_p12 = scmp.ne.s32.totalorder %s427_s17, %s2551_s25  ;;  %p2559_p8 = scmp.lt.s32.totalorder %s427_s17, %s427_s17 }
  0x26   : > { %p2560_p5 = scmp.lt.s32.totalorder %s2558_s29, %s2551_s25 }
  0x27   : > { %p2554_p1 = pnand %p2552_p12, %p2516_p0 }
  0x28   : > { %p2561_p3 = por %p2560_p5, %p2559_p8 }
  0x29   : > { %p2555_p2 = pneg %p2554_p1 }
  0x2b   : > { %p2562_p6 = pnand %p2561_p3, %p2555_p2 }
  0x2d   : > { %2565 = shalt.err (!%p2562_p6)
}
  0x2e   : > { %2402 = dma.hbm_to_vmem [thread:$0]  (!%p2809_p13), %s3203_s11, 16, %s427_s17, [#allocation9]  }
  0x2f   : > { %452 = sbr.rel (%p2797_p10) target bundleno = 2523 (0x9db), region = 76 }
  0x34   : > { %2617 = dma.done.wait (%p2801_p11), [#allocation6], 256  }
  0x35   : > { %2619 = vsyncadd (%p2801_p11), [#allocation6], 4294967040 }
  0x36   : > { %2621 = dma.done.wait (%p2801_p11), [#allocation9], 16  }
  0x37   : > { %2623 = vsyncadd (%p2801_p11), [#allocation9], 4294967280  ;;  %p501_p8 = scmp.lt.s32.totalorder %s2642_s16, 1  ;;  %vm511_vm0 = vcmask 261120   ;;  %v2474_v7 = vld [vmem:[%s3196_s4 + $0x8] sm:$0xff]   ;;  %v2656_v8 = vmov 0.0   ;;  %v675_v40 = vlaneseq }
  0x38   : > { %2278 = vmatprep.subr.bf16.mxu0 %v2656_v8  ;;  %vm2657_vm1 = vmmov 0   ;;  %v2475_v9 = vld [vmem:[%s3196_s4] sm:$0xff]   ;;  %2302 = vmatprep.subr.bf16.mxu1 %v2656_v8  ;;  %vm543_vm2 = vcmask 257024   ;;  %v2476_v19 = vld [vmem:[%s3197_s5 + $0x8] sm:$0xff]   ;;  %s2658_s28 = smov 104   ;;  %s2659_s24 = smov 120  }
  0x39   : > { %s502_s29 = scalar_select %p501_p8, %s2642_s16, 1  ;;  %2282 = vmatprep.mubr.msk.bf16.mxu0 %vm2657_vm1, %v2656_v8  ;;  %2279 = vmatpush3.bf16.msra.mxu0 %v2474_v7  ;;  %v2188_v14 = vld [vmem:[%s3193_s1] ss:$0 sm:$0xff]  ;;  %v2478_v22 = vld [vmem:[%s3195_s3 + $0x8] sm:$0xff]   ;;  %v2661_v38 = vmov 1983009808  }
  0x3a   : > { %2280 = vmatprep.subr.bf16.mxu0 %v2656_v8  ;;  %2304 = vmatprep.mubr.msk.bf16.mxu1 %vm2657_vm1, %v2656_v8  ;;  %v2189_v16 = vld [vmem:[%s3194_s2] ss:$0 sm:$0xff]  ;;  %s2660_s20 = smov 112   ;;  %v673_v39 = vunpack.c.l.s4 %v2661_v38  ;;  %v2662_v41 = vmov 1934713408   ;;  %v2911_v44 = vshrl.u32 %v675_v40, 7 }
  0x3b   : > { %s2187_s15 = sshll.u32 %s502_s29, 3  ;;  %v2477_v21 = vld [vmem:[%s3197_s5] sm:$0xff]   ;;  %v705_v42 = vunpack.c.l.s4 %v2662_v41  ;;  %vm810_vm3 = vcmask 60416   ;;  %vm1192_vm4 = vcmask 64512   ;;  %vm1445_vm6 = vcmask 1043456   ;;  %s2663_s17 = smov 16  }
  0x3c   : > { %s504_s21 = scalar_lea.vmem %s3192_s0, %s2187_s15  ;;  %v2479_v23 = vld [vmem:[%s3195_s3] sm:$0xff]   ;;  %v674_v43 = vunpack.c.0.s8 %v673_v39  ;;  %s2664_s18 = smov 8   ;;  %vm1776_vm7 = vcmask 130048   ;;  %vm1778_vm8 = vcmask 195584  }
  0x3d   : > { %v2846_v0 = vld [vmem:[%s504_s21] sm:$0xff]  ;;  %2281 = vmatpush3.bf16.msra.mxu0 %v2475_v9  ;;  %v706_v47 = vunpack.c.0.s8 %v705_v42  ;;  %s2665_s21 = smov 24   ;;  %s498_s15 = sand.u32 1, %s2634_s30  }
  0x3e   : > { %v512_v1 = vsel %vm511_vm0, %v2846_v0, 0.0  ;;  %2286 = vmatprep.subr.bf16.mxu0 %v2656_v8  ;;  %v2914_v48 = vsub.s32 %v674_v43, %v2911_v44  ;;  %s2235_s25 = sshll.u32 %s2642_s16, 7  ;;  %s2069_s16 = scalar_lea.sflag [#allocation7], %s498_s15 }
  0x3f   : > { %513 = vadd.xlane.f32.xlu0 %v512_v1  ;;  %v2917_v54 = vsub.s32 %v706_v47, %v2911_v44  ;;  %s2666_s19 = smov [#allocation10]  }
  0x40   : > { %s2570_s29 = sshll.u32 %s2666_s19, 4  ;;  %s2571_s29 = int_to_ptr.vmem [resolvable:$false] %s2570_s29 }
  0xc8   : > { %v514_v2 = vpop.xlane.xlu0 %513 }
  0xc9   : > { %v516_v3 = vmul.f32 0.03125, %v514_v2 }
  0xcb   : > { %v517_v4 = vsub.f32 %v2846_v0, %v516_v3 }
  0xcd   : > { %v518_v5 = vmul.f32 %v517_v4, %v517_v4 }
  0xcf   : > { %v519_v6 = vsel %vm511_vm0, %v518_v5, 0.0 }
  0xd0   : > { %520 = vadd.xlane.f32.xlu0 %v519_v6 }
 0x159   : > { %v521_v10 = vpop.xlane.xlu0 %520 }
 0x15a   : > { %v522_v11 = vmul.f32 0.03125, %v521_v10 }
 0x15c   : > { %v523_v12 = vadd.f32 1e-05, %v522_v11 }
 0x15e   : > { %2492 = vrsqrt.f32 %v523_v12 }
 0x16b   : > { %v2493_v13 = vpop.eup %2492 }
 0x16c   : > { %v525_v15 = vmul.f32 %v2493_v13, %v517_v4 }
 0x16e   : > { %v533_v17 = vmul.f32 %v2188_v14, %v525_v15 }
 0x170   : > { %v541_v18 = vadd.f32 %v2189_v16, %v533_v17 }
 0x172   : > { %v542_v20 = vpack.c.bf16 %v541_v18, %v541_v18 }
 0x174   : > { %544 = vst.msk [vmem:[#allocation4] sm:$0xf] %vm543_vm2, %v542_v20  ;;  %2283 = vmatmul.mubr.msk.bf16.vlgmr.msra.gmra.mxu0 %vm511_vm0, %v542_v20 }
 0x175   : > { %2287 = vmatpush3.bf16.msra.mxu0 %v2476_v19  ;;  %2290 = vmatprep.mubr.msk.bf16.mxu0 %vm2657_vm1, %v2656_v8 }
 0x176   : > { %2288 = vmatprep.subr.bf16.mxu0 %v2656_v8 }
 0x179   : > { %2289 = vmatpush3.bf16.msra.mxu0 %v2477_v21 }
 0x17a   : > { %2294 = vmatprep.subr.bf16.mxu0 %v2656_v8 }
 0x17b   : > { %v976_v24 = vld [vmem:[#allocation4] sm:$0xf] }
 0x17c   : > { %2291 = vmatmul.mubr.msk.bf16.vlgmr.msra.gmra.mxu0 %vm511_vm0, %v542_v20 }
 0x17d   : > { %2295 = vmatpush3.bf16.msra.mxu0 %v2478_v22  ;;  %2298 = vmatprep.mubr.msk.bf16.mxu0 %vm2657_vm1, %v2656_v8 }
 0x17e   : > { %2296 = vmatprep.subr.bf16.mxu0 %v2656_v8 }
 0x181   : > { %2297 = vmatpush3.bf16.msra.mxu0 %v2479_v23 }
 0x182   : > { %2308 = vmatprep.subr.bf16.mxu0 %v2656_v8 }
 0x184   : > { %2299 = vmatmul.mubr.msk.bf16.vlgmr.msra.gmra.mxu0 %vm511_vm0, %v976_v24 }
 0x185   : > { %2310 = vmatprep.mubr.msk.bf16.mxu0 %vm2657_vm1, %v2656_v8 }
 0x234   : > { %v598_v25 = vpop.f32.mrf.mxu0 }
 0x235   : > { %667 = vrot.lane.b32.xlu0 %v598_v25, %s2658_s28  ;;  %661 = vrot.lane.b32.xlu1 %v598_v25, %s2659_s24 }
 0x236   : > { %v2284_v26 = vpop.f32.mrf.mxu0 }
 0x238   : > { %v601_v27 = vpop.f32.mrf.mxu0 }
 0x239   : > { %664 = vrot.lane.b32.xlu1 %v598_v25, %s2660_s20 }
 0x23a   : > { %v2285_v28 = vpop.f32.mrf.mxu0 }
 0x23c   : > { %v2900_v29 = vpop.f32.mrf.mxu0 }
 0x23e   : > { %v2292_v30 = vpop.f32.mrf.mxu0 }
 0x240   : > { %v657_v31 = vpop.f32.mrf.mxu0 }
 0x242   : > { %v2293_v32 = vpop.f32.mrf.mxu0 }
 0x244   : > { %v1031_v33 = vpop.f32.mrf.mxu0 }
 0x245   : > { %v2902_v34 = vmul.f32 0.35355338, %v1031_v33 }
 0x246   : > { %v2300_v35 = vpop.f32.mrf.mxu0 }
 0x247   : > { %1039 = vrot.lane.b32.xlu1 %v2902_v34, %s2659_s24 }
 0x248   : > { %v1034_v36 = vpop.f32.mrf.mxu0 }
 0x24a   : > { %v2301_v37 = vpop.f32.mrf.mxu0 }
 0x24b   : > { %1042 = vrot.lane.b32.xlu1 %v2902_v34, %s2660_s20 }
 0x24f   : > { %1045 = vrot.lane.b32.xlu1 %v2902_v34, %s2658_s28 }
 0x2a7   : > { %v668_v45 = vpop.permute.xlu0 %667  ;;  %v662_v46 = vpop.permute.xlu1 %661 }
 0x2a8   : > { %v686_v49 = vcombine.low %v662_v46, %v668_v45  ;;  %v687_v50 = vcombine.high %v662_v46, %v668_v45 }
 0x2aa   : > { %v694_v55 = vrot.slane %v686_v49, %v2914_v48  ;;  %v701_v56 = vrot.slane %v687_v50, %v2914_v48 }
 0x2ab   : > { %v665_v51 = vpop.permute.xlu1 %664 }
 0x2ac   : > { %v670_v52 = vcombine.low %v598_v25, %v665_v51  ;;  %v671_v53 = vcombine.high %v598_v25, %v665_v51 }
 0x2ae   : > { %v678_v57 = vrot.slane %v670_v52, %v2914_v48  ;;  %v685_v58 = vrot.slane %v671_v53, %v2914_v48 }
 0x2b0   : > { %v702_v59 = vcombine.low %v678_v57, %v694_v55  ;;  %v703_v60 = vcombine.high %v678_v57, %v694_v55  ;;  %v718_v61 = vcombine.low %v685_v58, %v701_v56  ;;  %v719_v62 = vcombine.high %v685_v58, %v701_v56 }
 0x2b2   : > { %v710_v63 = vrot.slane %v702_v59, %v2917_v54  ;;  %v717_v1 = vrot.slane %v703_v60, %v2917_v54  ;;  %v726_v2 = vrot.slane %v718_v61, %v2917_v54  ;;  %v733_v3 = vrot.slane %v719_v62, %v2917_v54 }
 0x2b4   : > { %v738_v4 = vcombine.low %v710_v63, %v717_v1  ;;  %v2196_v5 = vcombine.high %v710_v63, %v717_v1  ;;  %v754_v6 = vcombine.low %v726_v2, %v733_v3  ;;  %v2197_v7 = vcombine.high %v726_v2, %v733_v3 }
 0x2b6   : > { %v745_v9 = vrot.slane %v738_v4, %v2914_v48  ;;  %v753_v10 = vrot.slane %v2196_v5, %v2914_v48  ;;  %v761_v11 = vrot.slane %v754_v6, %v2914_v48  ;;  %v769_v12 = vrot.slane %v2197_v7, %v2914_v48 }
 0x2b8   : > { %v770_v13 = vcombine.low %v745_v9, %v753_v10  ;;  %v771_v14 = vcombine.high %v745_v9, %v753_v10  ;;  %v786_v15 = vcombine.low %v761_v11, %v769_v12  ;;  %v787_v16 = vcombine.high %v761_v11, %v769_v12 }
 0x2b9   : > { %v1040_v17 = vpop.permute.xlu1 %1039 }
 0x2ba   : > { %v778_v18 = vrot.slane %v770_v13, %v2917_v54  ;;  %v785_v19 = vrot.slane %v771_v14, %v2917_v54  ;;  %v794_v20 = vrot.slane %v786_v15, %v2917_v54  ;;  %v801_v21 = vrot.slane %v787_v16, %v2917_v54 }
 0x2bc   : > { %v802_v22 = vcombine.low %v778_v18, %v794_v20  ;;  %v803_v23 = vcombine.high %v778_v18, %v794_v20  ;;  %v804_v24 = vcombine.low %v785_v19, %v801_v21  ;;  %v805_v25 = vcombine.high %v785_v19, %v801_v21 }
 0x2bd   : > { %v1043_v26 = vpop.permute.xlu1 %1042 }
 0x2be   : > { %v806_v27 = vpack.c.bf16 %v802_v22, %v802_v22  ;;  %v807_v28 = vpack.c.bf16 %v803_v23, %v803_v23  ;;  %v808_v30 = vpack.c.bf16 %v804_v24, %v804_v24  ;;  %v809_v31 = vpack.c.bf16 %v805_v25, %v805_v25 }
 0x2bf   : > { %v1048_v32 = vcombine.low %v2902_v34, %v1043_v26  ;;  %v1049_v33 = vcombine.high %v2902_v34, %v1043_v26  ;;  %v1382_v23 = vand.u32 127, %v675_v40 }
 0x2c0   : > { %811 = vst.msk [vmem:[#allocation2] sm:$0xf] %vm810_vm3, %v806_v27  ;;  %812 = vst.msk [vmem:[#allocation2 + $0x4] sm:$0xf] %vm810_vm3, %v807_v28 }
 0x2c1   : > { %813 = vst.msk [vmem:[#allocation2 + $0x8] sm:$0xf] %vm810_vm3, %v808_v30  ;;  %814 = vst.msk [vmem:[#allocation2 + $0xc] sm:$0xf] %vm810_vm3, %v809_v31  ;;  %v1046_v35 = vpop.permute.xlu1 %1045  ;;  %v1056_v38 = vrot.slane %v1048_v32, %v2914_v48  ;;  %v1063_v39 = vrot.slane %v1049_v33, %v2914_v48  ;;  %vm1383_vm5 = vcmp.gt.s32.totalorder %v1382_v23, %v2911_v44 }
 0x2c2   : > { %v1064_v36 = vcombine.low %v1040_v17, %v1046_v35  ;;  %v1065_v37 = vcombine.high %v1040_v17, %v1046_v35 }
 0x2c4   : > { %v1072_v41 = vrot.slane %v1064_v36, %v2914_v48  ;;  %v1079_v42 = vrot.slane %v1065_v37, %v2914_v48 }
 0x2c6   : > { %v1080_v43 = vcombine.low %v1056_v38, %v1072_v41  ;;  %v1081_v45 = vcombine.high %v1056_v38, %v1072_v41  ;;  %v1096_v46 = vcombine.low %v1063_v39, %v1079_v42  ;;  %v1097_v47 = vcombine.high %v1063_v39, %v1079_v42 }
 0x2c7   : > { %v1188_v49 = vld [vmem:[#allocation2] sm:$0xf]  ;;  %v1189_v50 = vld [vmem:[#allocation2 + $0x4] sm:$0xf] }
 0x2c8   : > { %v1088_v34 = vrot.slane %v1080_v43, %v2917_v54  ;;  %v1095_v51 = vrot.slane %v1081_v45, %v2917_v54  ;;  %v1104_v52 = vrot.slane %v1096_v46, %v2917_v54  ;;  %v1111_v53 = vrot.slane %v1097_v47, %v2917_v54  ;;  %v1190_v11 = vld [vmem:[#allocation2 + $0x8] sm:$0xf]  ;;  %v1191_v12 = vld [vmem:[#allocation2 + $0xc] sm:$0xf] }
 0x2c9   : > { %v1197_v55 = vsel %vm1192_vm4, %v1188_v49, 0  ;;  %v1243_v56 = vsel %vm1192_vm4, %v1189_v50, 0  ;;  %v1289_v17 = vsel %vm1192_vm4, %v1190_v11, 0  ;;  %v1335_v18 = vsel %vm1192_vm4, %v1191_v12, 0 }
 0x2ca   : > { %v1116_v57 = vcombine.low %v1088_v34, %v1095_v51  ;;  %v2203_v58 = vcombine.high %v1088_v34, %v1095_v51  ;;  %v1132_v59 = vcombine.low %v1104_v52, %v1111_v53  ;;  %v2204_v60 = vcombine.high %v1104_v52, %v1111_v53  ;;  %2303 = vmatpush3.bf16.xpose.msra.mxu1 %v1197_v55 }
 0x2cb   : > { %2309 = vmatpush3.bf16.xpose.msra.mxu0 %v1243_v56  ;;  %2314 = vmatprep.subr.bf16.mxu1 %v2656_v8 }
 0x2cc   : > { %v1123_v61 = vrot.slane %v1116_v57, %v2914_v48  ;;  %v1131_v62 = vrot.slane %v2203_v58, %v2914_v48  ;;  %v1139_v63 = vrot.slane %v1132_v59, %v2914_v48  ;;  %v1147_v1 = vrot.slane %v2204_v60, %v2914_v48  ;;  %2320 = vmatprep.subr.bf16.mxu0 %v2656_v8 }
 0x2ce   : > { %v1148_v2 = vcombine.low %v1123_v61, %v1131_v62  ;;  %v1164_v3 = vcombine.low %v1139_v63, %v1147_v1  ;;  %v1149_v4 = vcombine.high %v1123_v61, %v1131_v62  ;;  %v1165_v5 = vcombine.high %v1139_v63, %v1147_v1 }
 0x2d0   : > { %v1156_v6 = vrot.slane %v1148_v2, %v2917_v54  ;;  %v1172_v7 = vrot.slane %v1164_v3, %v2917_v54  ;;  %v1163_v15 = vrot.slane %v1149_v4, %v2917_v54  ;;  %v1179_v16 = vrot.slane %v1165_v5, %v2917_v54 }
 0x2d2   : > { %v1180_v9 = vcombine.low %v1156_v6, %v1172_v7  ;;  %v1181_v10 = vcombine.high %v1156_v6, %v1172_v7  ;;  %v1182_v19 = vcombine.low %v1163_v15, %v1179_v16  ;;  %v1183_v20 = vcombine.high %v1163_v15, %v1179_v16 }
 0x2d4   : > { %v1184_v13 = vpack.c.bf16 %v1180_v9, %v1180_v9  ;;  %v1185_v14 = vpack.c.bf16 %v1181_v10, %v1181_v10  ;;  %v1186_v21 = vpack.c.bf16 %v1182_v19, %v1182_v19  ;;  %v1187_v22 = vpack.c.bf16 %v1183_v20, %v1183_v20 }
 0x2d6   : > { %2305 = vmatmul.mubr.msk.bf16.vlgmr.msra.gmra.mxu1 %vm1192_vm4, %v1184_v13  ;;  %2311 = vmatmul.mubr.msk.bf16.vlgmr.msra.gmra.mxu0 %vm1192_vm4, %v1185_v14 }
 0x2d7   : > { %2315 = vmatpush3.bf16.xpose.msra.mxu1 %v1289_v17  ;;  %2321 = vmatpush3.bf16.xpose.msra.mxu0 %v1335_v18 }
 0x2d8   : > { %2316 = vmatprep.mubr.msk.bf16.mxu1 %vm2657_vm1, %v2656_v8  ;;  %2322 = vmatprep.mubr.msk.bf16.mxu0 %vm2657_vm1, %v2656_v8 }
 0x2d9   : > { %2326 = vmatprep.subr.bf16.mxu1 %v2656_v8  ;;  %2332 = vmatprep.subr.bf16.mxu0 %v2656_v8 }
 0x2de   : > { %2317 = vmatmul.mubr.msk.bf16.vlgmr.msra.gmra.mxu1 %vm1192_vm4, %v1186_v21  ;;  %2323 = vmatmul.mubr.msk.bf16.vlgmr.msra.gmra.mxu0 %vm1192_vm4, %v1187_v22 }
 0x2df   : > { %2328 = vmatprep.mubr.msk.bf16.mxu1 %vm2657_vm1, %v2656_v8  ;;  %2334 = vmatprep.mubr.msk.bf16.mxu0 %vm2657_vm1, %v2656_v8 }
 0x396   : > { %v1233_v24 = vpop.f32.mrf.mxu1  ;;  %v1279_v25 = vpop.f32.mrf.mxu0 }
 0x397   : > { %v1386_v26 = vsel %vm1383_vm5, -1e+30, %v1233_v24  ;;  %v1387_v27 = vsel %vm1383_vm5, -1e+30, %v1279_v25 }
 0x398   : > { %v2306_v28 = vpop.f32.mrf.mxu1  ;;  %v2312_v30 = vpop.f32.mrf.mxu0  ;;  %v1390_v31 = vsel %vm1192_vm4, %v1386_v26, -inf  ;;  %v1393_v32 = vsel %vm1192_vm4, %v1387_v27, -inf }
 0x399   : > { %1391 = vmax.xlane.f32.xlu1 %v1390_v31  ;;  %1394 = vmax.xlane.f32.xlu0 %v1393_v32 }
 0x39a   : > { %v1236_v33 = vpop.f32.mrf.mxu1  ;;  %v1282_v40 = vpop.f32.mrf.mxu0 }
 0x39c   : > { %v2307_v35 = vpop.f32.mrf.mxu1  ;;  %v2313_v36 = vpop.f32.mrf.mxu0 }
 0x39e   : > { %v1325_v37 = vpop.f32.mrf.mxu1  ;;  %v1371_v38 = vpop.f32.mrf.mxu0 }
 0x39f   : > { %v1388_v39 = vsel %vm1383_vm5, -1e+30, %v1325_v37  ;;  %v1389_v45 = vsel %vm1383_vm5, -1e+30, %v1371_v38 }
 0x3a0   : > { %v2318_v41 = vpop.f32.mrf.mxu1  ;;  %v2324_v42 = vpop.f32.mrf.mxu0  ;;  %v1396_v43 = vsel %vm1192_vm4, %v1388_v39, -inf  ;;  %v1399_v34 = vsel %vm1192_vm4, %v1389_v45, -inf }
 0x3a1   : > { %1397 = vmax.xlane.f32.xlu1 %v1396_v43 }
 0x3a2   : > { %v1328_v46 = vpop.f32.mrf.mxu1  ;;  %v1374_v47 = vpop.f32.mrf.mxu0 }
 0x3a4   : > { %v2319_v49 = vpop.f32.mrf.mxu1  ;;  %v2325_v50 = vpop.f32.mrf.mxu0 }
 0x3a5   : > { %1400 = vmax.xlane.f32.xlu1 %v1399_v34 }
 0x3af   : > { %816 = vrot.lane.b32.xlu0 %v2900_v29, %s2659_s24 }
 0x3b6   : > { %819 = vrot.lane.b32.xlu1 %v2900_v29, %s2660_s20  ;;  %s3145_s20 = scalar_lea.hbm %s3206_s14, %s2235_s25 }
 0x3ba   : > { %822 = vrot.lane.b32.xlu1 %v2900_v29, %s2658_s28 }
 0x422   : > { %v1392_v51 = vpop.xlane.xlu1 %1391  ;;  %v1395_v44 = vpop.xlane.xlu0 %1394 }
 0x423   : > { %v1402_v52 = vsub.f32 %v1386_v26, %v1392_v51  ;;  %v1403_v53 = vsub.f32 %v1387_v27, %v1395_v44 }
 0x425   : > { %v1406_v55 = vmul.f32 1.442695, %v1402_v52  ;;  %v1408_v56 = vmul.f32 1.442695, %v1403_v53 }
 0x426   : > { %v817_v6 = vpop.permute.xlu0 %816 }
 0x427   : > { %2494 = vpow2.f32 %v1406_v55 }
 0x428   : > { %2496 = vpow2.f32 %v1408_v56 }
 0x42a   : > { %v1398_v57 = vpop.xlane.xlu1 %1397 }
 0x42b   : > { %v1404_v58 = vsub.f32 %v1388_v39, %v1398_v57 }
 0x42d   : > { %v1410_v59 = vmul.f32 1.442695, %v1404_v58 }
 0x42e   : > { %v1401_v60 = vpop.xlane.xlu1 %1400 }
 0x42f   : > { %2498 = vpow2.f32 %v1410_v59  ;;  %v1405_v61 = vsub.f32 %v1389_v45, %v1401_v60 }
 0x431   : > { %v1412_v62 = vmul.f32 1.442695, %v1405_v61 }
 0x432   : > { %v820_v63 = vpop.permute.xlu1 %819 }
 0x433   : > { %2500 = vpow2.f32 %v1412_v62  ;;  %v825_v3 = vcombine.low %v2900_v29, %v820_v63  ;;  %v826_v4 = vcombine.high %v2900_v29, %v820_v63 }
 0x434   : > { %v2997_v1 = vpop.eup %2494 }
 0x435   : > { %v2999_v2 = vpop.eup %2496  ;;  %v1414_v5 = vsel %vm1192_vm4, %v2997_v1, 0.0  ;;  %v833_v12 = vrot.slane %v825_v3, %v2914_v48  ;;  %v840_v13 = vrot.slane %v826_v4, %v2914_v48 }
 0x436   : > { %1415 = vadd.xlane.f32.xlu0 %v1414_v5  ;;  %v1417_v7 = vsel %vm1192_vm4, %v2999_v2, 0.0  ;;  %v823_v9 = vpop.permute.xlu1 %822 }
 0x437   : > { %1418 = vadd.xlane.f32.xlu1 %v1417_v7  ;;  %v841_v10 = vcombine.low %v817_v6, %v823_v9  ;;  %v842_v11 = vcombine.high %v817_v6, %v823_v9 }
 0x439   : > { %v849_v14 = vrot.slane %v841_v10, %v2914_v48  ;;  %v856_v29 = vrot.slane %v842_v11, %v2914_v48 }
 0x43b   : > { %v857_v15 = vcombine.low %v833_v12, %v849_v14  ;;  %v858_v16 = vcombine.high %v833_v12, %v849_v14  ;;  %v873_v17 = vcombine.low %v840_v13, %v856_v29  ;;  %v874_v18 = vcombine.high %v840_v13, %v856_v29 }
 0x43c   : > { %v3011_v19 = vpop.eup %2498 }
 0x43d   : > { %v865_v20 = vrot.slane %v857_v15, %v2917_v54  ;;  %v872_v21 = vrot.slane %v858_v16, %v2917_v54  ;;  %v881_v22 = vrot.slane %v873_v17, %v2917_v54  ;;  %v888_v23 = vrot.slane %v874_v18, %v2917_v54  ;;  %v2480_v15 = vld [vmem:[%s3198_s6 + $0x8] sm:$0xff]  }
 0x43e   : > { %v1420_v24 = vsel %vm1192_vm4, %v3011_v19, 0.0 }
 0x43f   : > { %v893_v25 = vcombine.low %v865_v20, %v872_v21  ;;  %v2198_v26 = vcombine.high %v865_v20, %v872_v21  ;;  %v909_v27 = vcombine.low %v881_v22, %v888_v23  ;;  %v2199_v28 = vcombine.high %v881_v22, %v888_v23  ;;  %1421 = vadd.xlane.f32.xlu0 %v1420_v24 }
 0x440   : > { %v3019_v30 = vpop.eup %2500 }
 0x441   : > { %v900_v31 = vrot.slane %v893_v25, %v2914_v48  ;;  %v908_v32 = vrot.slane %v2198_v26, %v2914_v48  ;;  %v916_v33 = vrot.slane %v909_v27, %v2914_v48  ;;  %v924_v40 = vrot.slane %v2199_v28, %v2914_v48 }
 0x442   : > { %v1423_v35 = vsel %vm1192_vm4, %v3019_v30, 0.0 }
 0x443   : > { %v925_v36 = vcombine.low %v900_v31, %v908_v32  ;;  %v926_v37 = vcombine.high %v900_v31, %v908_v32  ;;  %v941_v38 = vcombine.low %v916_v33, %v924_v40  ;;  %v942_v39 = vcombine.high %v916_v33, %v924_v40  ;;  %1424 = vadd.xlane.f32.xlu0 %v1423_v35 }
 0x445   : > { %v933_v41 = vrot.slane %v925_v36, %v2917_v54  ;;  %v940_v42 = vrot.slane %v926_v37, %v2917_v54  ;;  %v949_v43 = vrot.slane %v941_v38, %v2917_v54  ;;  %v956_v45 = vrot.slane %v942_v39, %v2917_v54 }
 0x447   : > { %v957_v46 = vcombine.low %v933_v41, %v949_v43  ;;  %v958_v47 = vcombine.high %v933_v41, %v949_v43  ;;  %v959_v49 = vcombine.low %v940_v42, %v956_v45  ;;  %v960_v50 = vcombine.high %v940_v42, %v956_v45 }
 0x449   : > { %v961_v34 = vpack.c.bf16 %v957_v46, %v957_v46  ;;  %v962_v51 = vpack.c.bf16 %v958_v47, %v958_v47  ;;  %v963_v44 = vpack.c.bf16 %v959_v49, %v959_v49  ;;  %v964_v52 = vpack.c.bf16 %v960_v50, %v960_v50  ;;  %v2481_v47 = vld [vmem:[%s3198_s6] sm:$0xff]  }
 0x44b   : > { %965 = vst.msk [vmem:[#allocation3] sm:$0xf] %vm810_vm3, %v961_v34  ;;  %966 = vst.msk [vmem:[#allocation3 + $0x4] sm:$0xf] %vm810_vm3, %v962_v51 }
 0x44c   : > { %967 = vst.msk [vmem:[#allocation3 + $0x8] sm:$0xf] %vm810_vm3, %v963_v44  ;;  %968 = vst.msk [vmem:[#allocation3 + $0xc] sm:$0xf] %vm810_vm3, %v964_v52 }
 0x452   : > { %v1438_v53 = vld [vmem:[#allocation3] sm:$0xf]  ;;  %v1439_v55 = vld [vmem:[#allocation3 + $0x4] sm:$0xf] }
 0x453   : > { %v1447_v56 = vsel %vm1445_vm6, %v1438_v53, 0  ;;  %v1493_v57 = vsel %vm1445_vm6, %v1439_v55, 0  ;;  %v1440_v5 = vld [vmem:[#allocation3 + $0x8] sm:$0xf]  ;;  %v1441_v7 = vld [vmem:[#allocation3 + $0xc] sm:$0xf] }
 0x454   : > { %2327 = vmatpush3.bf16.msra.mxu1 %v1447_v56  ;;  %2333 = vmatpush3.bf16.msra.mxu0 %v1493_v57  ;;  %v1539_v10 = vsel %vm1445_vm6, %v1440_v5, 0  ;;  %v1585_v11 = vsel %vm1445_vm6, %v1441_v7, 0 }
 0x455   : > { %2338 = vmatprep.subr.bf16.mxu1 %v2656_v8  ;;  %2344 = vmatprep.subr.bf16.mxu0 %v2656_v8 }
 0x4bf   : > { %v1416_v58 = vpop.xlane.xlu0 %1415 }
 0x4c0   : > { %2502 = vrcp.f32 %v1416_v58  ;;  %v1419_v59 = vpop.xlane.xlu1 %1418 }
 0x4c1   : > { %2504 = vrcp.f32 %v1419_v59 }
 0x4c8   : > { %v1422_v60 = vpop.xlane.xlu0 %1421 }
 0x4c9   : > { %2506 = vrcp.f32 %v1422_v60 }
 0x4cc   : > { %v1425_v61 = vpop.xlane.xlu0 %1424 }
 0x4cd   : > { %v2503_v62 = vpop.eup %2502  ;;  %2508 = vrcp.f32 %v1425_v61 }
 0x4ce   : > { %v2505_v63 = vpop.eup %2504  ;;  %v1430_v3 = vmul.f32 %v2503_v62, %v2997_v1 }
 0x4cf   : > { %v1431_v4 = vmul.f32 %v2505_v63, %v2999_v2 }
 0x4d0   : > { %v1434_v6 = vpack.c.bf16 %v1430_v3, %v1430_v3 }
 0x4d1   : > { %v1435_v9 = vpack.c.bf16 %v1431_v4, %v1431_v4 }
 0x4d2   : > { %2329 = vmatmul.mubr.msk.bf16.vlgmr.msra.gmra.mxu1 %vm1192_vm4, %v1434_v6 }
 0x4d3   : > { %2335 = vmatmul.mubr.msk.bf16.vlgmr.msra.gmra.mxu0 %vm1192_vm4, %v1435_v9  ;;  %2339 = vmatpush3.bf16.msra.mxu1 %v1539_v10 }
 0x4d4   : > { %2345 = vmatpush3.bf16.msra.mxu0 %v1585_v11  ;;  %2340 = vmatprep.mubr.msk.bf16.mxu1 %vm2657_vm1, %v2656_v8 }
 0x4d5   : > { %2346 = vmatprep.mubr.msk.bf16.mxu0 %vm2657_vm1, %v2656_v8  ;;  %2350 = vmatprep.subr.bf16.mxu1 %v2656_v8 }
 0x4d6   : > { %v2507_v1 = vpop.eup %2506  ;;  %2358 = vmatprep.subr.bf16.mxu0 %v2656_v8 }
 0x4d7   : > { %v1432_v2 = vmul.f32 %v2507_v1, %v3011_v19 }
 0x4d9   : > { %v1436_v12 = vpack.c.bf16 %v1432_v2, %v1432_v2 }
 0x4da   : > { %v2509_v13 = vpop.eup %2508 }
 0x4db   : > { %2341 = vmatmul.mubr.msk.bf16.vlgmr.msra.gmra.mxu1 %vm1192_vm4, %v1436_v12  ;;  %v1433_v14 = vmul.f32 %v2509_v13, %v3019_v30 }
 0x4dc   : > { %2354 = vmatprep.mubr.msk.bf16.mxu1 %vm2657_vm1, %v2656_v8  ;;  %2351 = vmatpush3.bf16.msra.mxu1 %v2480_v15 }
 0x4dd   : > { %v1437_v29 = vpack.c.bf16 %v1433_v14, %v1433_v14  ;;  %2352 = vmatprep.subr.bf16.mxu1 %v2656_v8 }
 0x4df   : > { %2347 = vmatmul.mubr.msk.bf16.vlgmr.msra.gmra.mxu0 %vm1192_vm4, %v1437_v29  ;;  %v2215_v29 = vld [vmem:[%s3199_s7] ss:$0 sm:$0xff] }
 0x4e0   : > { %2362 = vmatprep.mubr.msk.bf16.mxu0 %vm2657_vm1, %v2656_v8  ;;  %2353 = vmatpush3.bf16.msra.mxu1 %v2481_v47  ;;  %v2490_v47 = vld [vmem:[%s3204_s12 + $0x8] sm:$0xff]  }
 0x4e1   : > { %2366 = vmatprep.subr.bf16.mxu1 %v2656_v8 }
 0x592   : > { %v1483_v16 = vpop.f32.mrf.mxu1 }
 0x593   : > { %v1529_v17 = vpop.f32.mrf.mxu0 }
 0x594   : > { %v2330_v18 = vpop.f32.mrf.mxu1 }
 0x595   : > { %v2336_v19 = vpop.f32.mrf.mxu0 }
 0x596   : > { %v1486_v20 = vpop.f32.mrf.mxu1 }
 0x597   : > { %v1532_v21 = vpop.f32.mrf.mxu0 }
 0x598   : > { %v2331_v22 = vpop.f32.mrf.mxu1 }
 0x599   : > { %v2337_v23 = vpop.f32.mrf.mxu0 }
 0x59b   : > { %v1575_v24 = vpop.f32.mrf.mxu1 }
 0x59c   : > { %v1627_v26 = vcombine.low %v1483_v16, %v1575_v24  ;;  %v1628_v27 = vcombine.high %v1483_v16, %v1575_v24 }
 0x59d   : > { %v2342_v25 = vpop.f32.mrf.mxu1 }
 0x59e   : > { %v1635_v35 = vrot.slane %v1627_v26, %v2914_v48  ;;  %v1642_v36 = vrot.slane %v1628_v27, %v2914_v48  ;;  %v2482_v27 = vld [vmem:[#allocation5 + $0x8] sm:$0xff]  }
 0x59f   : > { %v1578_v28 = vpop.f32.mrf.mxu1  ;;  %v1621_v30 = vpop.f32.mrf.mxu0  ;;  %2359 = vmatpush3.bf16.msra.mxu0 %v2482_v27 }
 0x5a0   : > { %v1643_v31 = vcombine.low %v1529_v17, %v1621_v30  ;;  %v1644_v32 = vcombine.high %v1529_v17, %v1621_v30  ;;  %v2483_v28 = vld [vmem:[#allocation5] sm:$0xff]   ;;  %2360 = vmatprep.subr.bf16.mxu0 %v2656_v8 }
 0x5a1   : > { %v2343_v33 = vpop.f32.mrf.mxu1  ;;  %v2348_v40 = vpop.f32.mrf.mxu0 }
 0x5a2   : > { %v1651_v37 = vrot.slane %v1643_v31, %v2914_v48  ;;  %v1658_v38 = vrot.slane %v1644_v32, %v2914_v48  ;;  %v2219_v33 = vld [vmem:[%s3200_s8] ss:$0 sm:$0xff] }
 0x5a3   : > { %v1624_v39 = vpop.f32.mrf.mxu0  ;;  %2361 = vmatpush3.bf16.msra.mxu0 %v2483_v28 }
 0x5a4   : > { %v1659_v41 = vcombine.low %v1635_v35, %v1651_v37  ;;  %v1660_v42 = vcombine.high %v1635_v35, %v1651_v37  ;;  %v1675_v43 = vcombine.low %v1642_v36, %v1658_v38  ;;  %v1676_v45 = vcombine.high %v1642_v36, %v1658_v38  ;;  %v2220_v35 = vld [vmem:[%s3201_s9] ss:$0 sm:$0xff]  ;;  %v2484_v39 = vld [vmem:[%s3204_s12 + $0x38] sm:$0xff]  }
 0x5a5   : > { %v2349_v46 = vpop.f32.mrf.mxu0 }
 0x5a6   : > { %v1667_v49 = vrot.slane %v1659_v41, %v2917_v54  ;;  %v1674_v50 = vrot.slane %v1660_v42, %v2917_v54  ;;  %v1683_v34 = vrot.slane %v1675_v43, %v2917_v54  ;;  %v1690_v51 = vrot.slane %v1676_v45, %v2917_v54  ;;  %v2485_v41 = vld [vmem:[%s3204_s12 + $0x30] sm:$0xff]   ;;  %v2486_v42 = vld [vmem:[%s3204_s12 + $0x28] sm:$0xff]   ;;  %v2487_v43 = vld [vmem:[%s3204_s12 + $0x20] sm:$0xff]  }
 0x5a7   : > { %v2488_v45 = vld [vmem:[%s3204_s12 + $0x18] sm:$0xff]   ;;  %v2489_v46 = vld [vmem:[%s3204_s12 + $0x10] sm:$0xff]  }
 0x5a8   : > { %v1695_v44 = vcombine.low %v1667_v49, %v1674_v50  ;;  %v2213_v52 = vcombine.high %v1667_v49, %v1674_v50  ;;  %v1711_v53 = vcombine.low %v1683_v34, %v1690_v51  ;;  %v2214_v55 = vcombine.high %v1683_v34, %v1690_v51  ;;  %v2491_v49 = vld [vmem:[%s3204_s12] sm:$0xff]   ;;  %v2221_v50 = vld [vmem:[#allocation8] ss:$0 sm:$0xff] }
 0x5aa   : > { %v1702_v56 = vrot.slane %v1695_v44, %v2914_v48  ;;  %v1710_v57 = vrot.slane %v2213_v52, %v2914_v48  ;;  %v1718_v58 = vrot.slane %v1711_v53, %v2914_v48  ;;  %v1726_v59 = vrot.slane %v2214_v55, %v2914_v48 }
 0x5ac   : > { %v1728_v60 = vcombine.high %v1702_v56, %v1710_v57  ;;  %v1744_v61 = vcombine.high %v1718_v58, %v1726_v59  ;;  %v1727_v62 = vcombine.low %v1702_v56, %v1710_v57  ;;  %v1743_v63 = vcombine.low %v1718_v58, %v1726_v59 }
 0x5ae   : > { %v1742_v3 = vrot.slane %v1728_v60, %v2917_v54  ;;  %v1758_v4 = vrot.slane %v1744_v61, %v2917_v54  ;;  %v1735_v5 = vrot.slane %v1727_v62, %v2917_v54  ;;  %v1751_v6 = vrot.slane %v1743_v63, %v2917_v54 }
 0x5b0   : > { %v1761_v7 = vcombine.low %v1742_v3, %v1758_v4  ;;  %v1760_v9 = vcombine.high %v1735_v5, %v1751_v6  ;;  %v1759_v10 = vcombine.low %v1735_v5, %v1751_v6  ;;  %v1762_v48 = vcombine.high %v1742_v3, %v1758_v4  ;;  %v2225_v3 = vld [vmem:[%s3205_s13] ss:$0 sm:$0xff] }
 0x5b2   : > { %1768 = vrot.lane.b32.xlu0 %v1761_v7, %s2663_s17  ;;  %1764 = vrot.lane.b32.xlu1 %v1760_v9, %s2664_s18  ;;  %s2186_s17 = sshll.u32 %s498_s15, 3 }
 0x5b3   : > { %s500_s26 = scalar_lea.vmem [#allocation10], %s2186_s17  ;;  %s2572_s17 = scalar_lea.vmem %s2571_s29, 256 }
 0x5b4   : > { %s2083_s27 = sshll.u32 %s500_s26, 4  ;;  %s3147_s27 = int_to_ptr.vmem [resolvable:$true] %s2083_s27 }
 0x5b5   : > { %s2566_s22 = scalar_lea.vmem %s3147_s27, 128  ;;  %p2573_p0 = scmp.lt.s32.totalorder %s3147_s27, %s2571_s29 }
 0x5b6   : > { %1772 = vrot.lane.b32.xlu1 %v1762_v48, %s2665_s21  ;;  %p2567_p10 = scmp.ne.s32.totalorder %s3147_s27, %s2566_s22  ;;  %p2574_p7 = scmp.lt.s32.totalorder %s2572_s17, %s2566_s22 }
 0x5b8   : > { %p2568_p11 = pnand %p2567_p10, %p2782_p4  ;;  %p2575_p9 = por %p2574_p7, %p2573_p0 }
 0x5ba   : > { %p2569_p13 = pneg %p2568_p11 }
 0x5bc   : > { %p2576_p12 = pnand %p2575_p9, %p2569_p13 }
 0x624   : > { %v1765_v11 = vpop.permute.xlu1 %1764  ;;  %v1769_v1 = vpop.permute.xlu0 %1768 }
 0x625   : > { %v1775_v2 = vsel %vm1192_vm4, %v1759_v10, %v1765_v11 }
 0x626   : > { %v1777_v13 = vsel %vm1776_vm7, %v1775_v2, %v1769_v1 }
 0x628   : > { %v1773_v12 = vpop.permute.xlu1 %1772 }
 0x629   : > { %v1779_v14 = vsel %vm1778_vm8, %v1777_v13, %v1773_v12 }
 0x62a   : > { %v1780_v54 = vpack.c.bf16 %v1779_v14, %v1779_v14 }
 0x62c   : > { %2355 = vmatmul.mubr.msk.bf16.vlgmr.msra.gmra.mxu1 %vm511_vm0, %v1780_v54 }
 0x62d   : > { %2382 = vmatprep.mubr.msk.bf16.mxu1 %vm2657_vm1, %v2656_v8  ;;  %2367 = vmatpush3.bf16.msra.mxu1 %v2484_v39 }
 0x62e   : > { %2368 = vmatprep.subr.bf16.mxu1 %v2656_v8 }
 0x631   : > { %2369 = vmatpush3.bf16.msra.mxu1 %v2485_v41 }
 0x632   : > { %2370 = vmatprep.subr.bf16.mxu1 %v2656_v8 }
 0x635   : > { %2371 = vmatpush3.bf16.msra.mxu1 %v2486_v42 }
 0x636   : > { %2372 = vmatprep.subr.bf16.mxu1 %v2656_v8 }
 0x639   : > { %2373 = vmatpush3.bf16.msra.mxu1 %v2487_v43 }
 0x63a   : > { %2374 = vmatprep.subr.bf16.mxu1 %v2656_v8 }
 0x63d   : > { %2375 = vmatpush3.bf16.msra.mxu1 %v2488_v45 }
 0x63e   : > { %2376 = vmatprep.subr.bf16.mxu1 %v2656_v8 }
 0x641   : > { %2377 = vmatpush3.bf16.msra.mxu1 %v2489_v46 }
 0x642   : > { %2378 = vmatprep.subr.bf16.mxu1 %v2656_v8 }
 0x645   : > { %2379 = vmatpush3.bf16.msra.mxu1 %v2490_v47 }
 0x646   : > { %2380 = vmatprep.subr.bf16.mxu1 %v2656_v8 }
 0x649   : > { %2381 = vmatpush3.bf16.msra.mxu1 %v2491_v49 }
 0x6ec   : > { %v1841_v15 = vpop.f32.mrf.mxu1 }
 0x6ed   : > { %v1842_v16 = vadd.f32 %v2215_v29, %v1841_v15 }
 0x6ee   : > { %v2356_v17 = vpop.f32.mrf.mxu1 }
 0x6ef   : > { %v3091_v18 = vadd.f32 %v1842_v16, %v2846_v0 }
 0x6f0   : > { %v1844_v19 = vpop.f32.mrf.mxu1 }
 0x6f1   : > { %v1848_v20 = vsel %vm511_vm0, %v3091_v18, 0.0 }
 0x6f2   : > { %1849 = vadd.xlane.f32.xlu1 %v1848_v20  ;;  %v2357_v21 = vpop.f32.mrf.mxu1 }
 0x77b   : > { %v1850_v22 = vpop.xlane.xlu1 %1849 }
 0x77c   : > { %v1852_v23 = vmul.f32 0.03125, %v1850_v22 }
 0x77e   : > { %v1853_v24 = vsub.f32 %v3091_v18, %v1852_v23 }
 0x780   : > { %v1854_v25 = vmul.f32 %v1853_v24, %v1853_v24 }
 0x782   : > { %v1855_v26 = vsel %vm511_vm0, %v1854_v25, 0.0 }
 0x783   : > { %1856 = vadd.xlane.f32.xlu0 %v1855_v26 }
 0x80c   : > { %v1857_v0 = vpop.xlane.xlu0 %1856 }
 0x80d   : > { %v1858_v30 = vmul.f32 0.03125, %v1857_v0 }
 0x80f   : > { %v1859_v31 = vadd.f32 1e-05, %v1858_v30 }
 0x811   : > { %2510 = vrsqrt.f32 %v1859_v31 }
 0x81e   : > { %v2511_v32 = vpop.eup %2510 }
 0x81f   : > { %v1861_v40 = vmul.f32 %v2511_v32, %v1853_v24 }
 0x821   : > { %v1869_v36 = vmul.f32 %v2219_v33, %v1861_v40 }
 0x823   : > { %v1877_v37 = vadd.f32 %v2220_v35, %v1869_v36 }
 0x825   : > { %v1878_v38 = vpack.c.bf16 %v1877_v37, %v1877_v37 }
 0x827   : > { %2363 = vmatmul.mubr.msk.bf16.vlgmr.msra.gmra.mxu0 %vm511_vm0, %v1878_v38 }
 0x8e7   : > { %v1939_v34 = vpop.f32.mrf.mxu0 }
 0x8e8   : > { %v1940_v51 = vadd.f32 %v2221_v50, %v1939_v34 }
 0x8e9   : > { %v2364_v44 = vpop.f32.mrf.mxu0 }
 0x8ea   : > { %v1946_v52 = vmul.f32 %v1940_v51, %v1940_v51  ;;  %v1945_v61 = vmul.f32 0.5, %v1940_v51 }
 0x8eb   : > { %v1942_v53 = vpop.f32.mrf.mxu0 }
 0x8ec   : > { %v1947_v55 = vmul.f32 %v1946_v52, %v1940_v51 }
 0x8ed   : > { %v2365_v56 = vpop.f32.mrf.mxu0 }
 0x8ee   : > { %v1948_v57 = vmul.f32 0.044715, %v1947_v55 }
 0x8f0   : > { %v1949_v58 = vadd.f32 %v1948_v57, %v1940_v51 }
 0x8f2   : > { %v1950_v59 = vmul.f32 0.7978846, %v1949_v58 }
 0x8f4   : > { %2512 = vtanh.f32 %v1950_v59 }
 0x901   : > { %v2513_v60 = vpop.eup %2512 }
 0x902   : > { %v1952_v62 = vadd.f32 1.0, %v2513_v60 }
 0x904   : > { %v1953_v63 = vmul.f32 %v1952_v62, %v1945_v61 }
 0x906   : > { %v1954_v8 = vpack.c.bf16 %v1953_v63, %v1953_v63 }
 0x908   : > { %2383 = vmatmul.mubr.bf16.vlgmr.msra.gmra.mxu1 %v1954_v8 }
 0x9c8   : > { %v2060_v4 = vpop.f32.mrf.mxu1 }
 0x9c9   : > { %v2061_v5 = vadd.f32 %v2225_v3, %v2060_v4 }
 0x9ca   : > { %v2384_v6 = vpop.f32.mrf.mxu1 }
 0x9cb   : > { %v2066_v7 = vadd.f32 %v2061_v5, %v3091_v18 }
 0x9cc   : > { %v2063_v9 = vpop.f32.mrf.mxu1 }
 0x9cd   : > { %2067 = vst.msk [vmem:[%s500_s26] sm:$0xff] %vm511_vm0, %v2066_v7 }
 0x9ce   : > { %v2385_v10 = vpop.f32.mrf.mxu1 }
 0x9cf   : > { %2579 = shalt.err (!%p2576_p12)
}
 0x9d0   : > { %s2580_s18 = scalar_lea.hbm %s3145_s20, 128  ;;  %s2584_s25 = scalar_lea.hbm %s3206_s14, 256 }
 0x9d1   : > { %p2581_p1 = scmp.ne.s32.totalorder %s3145_s20, %s2580_s18  ;;  %p2585_p3 = scmp.lt.s32.totalorder %s3145_s20, %s3206_s14 }
 0x9d2   : > { %p2586_p6 = scmp.lt.s32.totalorder %s2584_s25, %s2580_s18 }
 0x9d3   : > { %p2582_p2 = pnand %p2581_p1, %p2782_p4 }
 0x9d4   : > { %p2587_p8 = por %p2586_p6, %p2585_p3 }
 0x9d5   : > { %p2583_p5 = pneg %p2582_p2 }
 0x9d7   : > { %p2588_p10 = pnand %p2587_p8, %p2583_p5 }
 0x9d9   : > { %2591 = shalt.err (!%p2588_p10)
}
 0x9da   : > { %2394 = dma.vmem_to_hbm [thread:$0]  (%p2782_p4), %s3147_s27, 128, %s3145_s20, %s2069_s16  }
 0x9db PF: > { %s3226_s24 = sld [smem:[#allocation17_spill]] }
 0x9dc   : > { %s3227_s22 = sld [smem:[#allocation14_spill]] }
 0x9dd   : > { %s3228_s19 = sld [smem:[#allocation19_spill]] }
 0x9e1   : > { %p2411_p11 = scmp.ge.s32.totalorder %s3226_s24, 2 }
 0x9e2   : > { %s2095_s29 = sand.u32 1, %s3227_s22  }
 0x9e3   : > { %p3229_p13 = scmp.ne.s32.totalorder %s3228_s19, 0  ;;  %s2096_s17 = scalar_lea.sflag [#allocation7], %s2095_s29 }
 0x9e5   : > { %p2404_p0 = pnand %p2411_p11, %p3229_p13 }
 0x9e7   : > { %p2405_p7 = pneg %p2404_p0 }
 0x9e9   : > { %2625 = dma.done.wait (%p2405_p7), %s2096_s17, 128  }
 0x9ea   : > { %2627 = vsyncadd (%p2405_p7), %s2096_s17, 4294967168  ;;  %s29_s18 = sadd.s32 1, %s3226_s24   ;;  %s3230_s23 = sld [smem:[#allocation15_spill]] }
 0x9eb   : > { %p26_p9 = scmp.ge.s32.totalorder %s29_s18, 4   ;;  %s3231_s15 = sld [smem:[#allocation20_spill]] }
 0x9ec   : > { %s3232_s16 = sld [smem:[#allocation16_spill]]  ;;  %s3234_s29 = smov %s2634_s30 }
 0x9ed   : > { %s3233_s17 = sld [smem:[#allocation18_spill]]  ;;  %28 = sbr.rel (!%p26_p9) target bundleno = 6 (0x6), region = 126 }
 0x9f0   : > { %s3235_s30 = smov %s3230_s23 }
 0x9f2   :  { %2101 = vsyncpa [#allocation6], 1 }
 0x9f3   :  { %2103 = vsyncpa [#allocation6 + $0x1], 1 }
 0x9f4   :  { %2104 = vsyncpa [#allocation9], 1 }
 0x9f5   :  { %2105 = vsyncpa [#allocation7], 1 }
 0x9f6   :  { %2107 = vsyncpa [#allocation7 + $0x1], 1 }

</bundles_post_ra>
